<compile_context>
chip_gen: v7x
topology: tpu7x:2x2x1
jax: 0.10.0
libtpu: 0.0.40
codegen_flags: <defaults>
</compile_context>

<pallas_src>
import functools

import jax
import jax.numpy as jnp
import numpy as np
from jax.experimental import pallas as pl
from jax.experimental.pallas import tpu as pltpu

K = 3                     # kernel_size
KT = K * K * K            # 27 taps total
N_TAPS = KT - 1           # 26 non-center taps (center tangent is exactly 0)


def _round_up(n, m):
    return (n + m - 1) // m * m


def _tap_tables(D, H, W):
    """Single source of truth for the 26 non-center taps.

    Returns (shifts, keep, mask):
      shifts : tuple of flattened-spatial shifts  dd*HW + dh*W + dw
      keep   : int32[26]   indices into the kd*9+kh*3+kw weight ordering
      mask   : f32[26, DHW] 1 where the tap's neighbor lies inside the volume
    All three share the SAME tap order by construction.
    """
    HW = H * W
    shifts, keep, mask_rows = [], [], []
    for kd in range(K):
        for kh in range(K):
            for kw in range(K):
                if kd == 1 and kh == 1 and kw == 1:
                    continue                      # center tap: Log_p(p) == 0
                dd, dh, dw = kd - 1, kh - 1, kw - 1
                shifts.append(dd * HW + dh * W + dw)
                keep.append(kd * K * K + kh * K + kw)
                m = np.zeros((D, H, W), np.float32)
                d0, d1 = max(0, -dd), min(D, D - dd)
                h0, h1 = max(0, -dh), min(H, H - dh)
                w0, w1 = max(0, -dw), min(W, W - dw)
                m[d0:d1, h0:h1, w0:w1] = 1.0
                mask_rows.append(m.reshape(-1))
    assert len(shifts) == N_TAPS
    return tuple(shifts), np.asarray(keep, np.int32), np.stack(mask_rows, 0)


def _mvc_kernel(x_ref, m_ref, w_ref, o_ref, *, DHW, shifts):
    """One batch element per grid step.

    x_ref : (1, Cpad, DHW)    positive manifold values (padded channels == 1.0)
    m_ref : (26, DHW)         per-tap validity mask (1 inside volume)
    w_ref : (26, Cpad, Cpad)  per-tap weights [tap, cout, cin]; pads are zero
    o_ref : (1, Cpad, DHW)
    """
    lx = jnp.log(x_ref[0])                        # (Cpad, DHW); EUP op
    acc = jnp.zeros(lx.shape, jnp.float32)        # register-resident accumulator

    # Per-tap accumulate: 26 tiny MXU dots instead of one 27x-amplified slab.
    for t, s in enumerate(shifts):
        # rolled[:, p] == lx[:, (p + s) % DHW]; wrap-around and out-of-volume
        # neighbors are zeroed by the matching mask row (same tap order).
        rolled = pltpu.roll(lx, (-s) % DHW, axis=1)          # XLU lane rotation
        diff = (rolled - lx) * m_ref[t:t + 1, :]             # MVLog tangent vecs
        acc = acc + jnp.dot(w_ref[t], diff,
                            preferred_element_type=jnp.float32)

    # MVExp: Exp_p(v) = p * exp(v).  Re-read x (vld is cheap, 3 slots/cycle)
    # instead of holding it live across the tap loop.
    o_ref[0] = (x_ref[0] * jnp.exp(acc)).astype(o_ref.dtype)


def manifold_valued_conv(x_ncdhw, weight_mask):
    """x_ncdhw: [B, Cin, D, H, W] (positive), weight_mask: [Cout, K, K, K, Cin]."""
    B, Cin, D, H, W = x_ncdhw.shape
    Cout = weight_mask.shape[0]
    assert Cout == Cin, "MVExp base point requires output_channels == input_channels"
    DHW = D * H * W
    Cpad = _round_up(max(Cin, Cout), 8)           # sublane-dense channel blocks

    shifts, keep, mask_np = _tap_tables(D, H, W)

    # NCDHW is already channels-first / spatial-contiguous: reshape is free.
    # Pad channels with 1.0 (log 1 == 0) so padded rows contribute nothing and
    # every in-kernel op uses all 8 sublanes.
    x = x_ncdhw.reshape(B, Cin, DHW).astype(jnp.float32)
    if Cpad != Cin:
        x = jnp.pad(x, ((0, 0), (0, Cpad - Cin), (0, 0)), constant_values=1.0)

    # Per-tap weights [tap, cout, cin] in the SAME tap order as shifts / mask;
    # padded rows/cols are zero.
    w = jnp.transpose(weight_mask.astype(jnp.float32), (1, 2, 3, 0, 4))
    w = w.reshape(KT, Cout, Cin)[keep]
    w = jnp.pad(w, ((0, 0), (0, Cpad - Cout), (0, Cpad - Cin)))

    mask = jnp.asarray(mask_np)                   # (26, DHW), lane-dense

    # Real per-step VMEM footprint: double-buffered x/o/mask/weight blocks plus
    # in-kernel live values (lx, acc, diff, exp temporaries) — conservative.
    lane_bytes = DHW * 4
    xo_blk = Cpad * lane_bytes                    # x block == o block
    m_blk = N_TAPS * lane_bytes
    w_blk = N_TAPS * Cpad * max(Cpad, 128) * 4    # lanes padded to 128 in VMEM
    live = 8 * Cpad * lane_bytes
    footprint = 2 * (2 * xo_blk + m_blk + w_blk) + live
    vmem_limit = int(min(32 << 20, max(2 * footprint, 4 << 20)))

    kernel = functools.partial(_mvc_kernel, DHW=DHW, shifts=shifts)

    y = pl.pallas_call(
        kernel,
        out_shape=jax.ShapeDtypeStruct((B, Cpad, DHW), jnp.float32),
        grid_spec=pltpu.PrefetchScalarGridSpec(
            num_scalar_prefetch=0,
            grid=(B,),                            # one batch per step: DMA/compute
            in_specs=[                            # overlap + v7x megacore sharding
                pl.BlockSpec((1, Cpad, DHW), lambda i: (i, 0, 0)),
                pl.BlockSpec((N_TAPS, DHW), lambda i: (0, 0)),
                pl.BlockSpec((N_TAPS, Cpad, Cpad), lambda i: (0, 0, 0)),
            ],
            out_specs=pl.BlockSpec((1, Cpad, DHW), lambda i: (i, 0, 0)),
        ),
        compiler_params=pltpu.CompilerParams(
            dimension_semantics=("parallel",),
            vmem_limit_bytes=vmem_limit),
    )(x, mask, w)

    return y[:, :Cout, :].reshape(B, Cout, D, H, W)


def manifold_valued_conv_reference(x_ncdhw, weight_mask):
    """Pure-JAX reference with identical semantics (for validation)."""
    B, Cin, D, H, W = x_ncdhw.shape
    Cout = weight_mask.shape[0]
    x = jnp.transpose(x_ncdhw, (0, 2, 3, 4, 1)).astype(jnp.float32)
    lx = jnp.log(x)
    lxp = jnp.pad(lx, ((0, 0), (1, 1), (1, 1), (1, 1), (0, 0)))
    msk = jnp.pad(jnp.ones((D, H, W), jnp.float32), ((1, 1), (1, 1), (1, 1)))
    w = jnp.transpose(weight_mask, (1, 2, 3, 4, 0)).astype(jnp.float32)
    acc = jnp.zeros((B, D, H, W, Cout), jnp.float32)
    for kd in range(K):
        for kh in range(K):
            for kw in range(K):
                win = lxp[:, kd:kd + D, kh:kh + H, kw:kw + W, :]
                mwin = msk[kd:kd + D, kh:kh + H, kw:kw + W]
                diff = win - lx * mwin[None, ..., None]
                acc = acc + jnp.einsum("bdhwi,io->bdhwo", diff, w[kd, kh, kw],
                                       precision=jax.lax.Precision.HIGHEST)
    y = x * jnp.exp(acc)
    return jnp.transpose(y, (0, 4, 1, 2, 3))


if __name__ == "__main__":
    B, C, D, H, W = 2, 4, 8, 8, 8          # input_channels = output_channels = 4
    key = jax.random.PRNGKey(0)
    kx, kw = jax.random.split(key)

    # Manifold-valued (positive) input, PyTorch NCDHW layout.
    x = jax.random.uniform(kx, (B, C, D, H, W), jnp.float32, minval=0.5, maxval=1.5)
    # weight_mask ~ torch.rand([output_channels, k, k, k, input_channels])
    weight_mask = jax.random.uniform(kw, (C, K, K, K, C), jnp.float32)

    out = manifold_valued_conv(x, weight_mask)
    out = jax.block_until_ready(out)

    ref = jax.block_until_ready(manifold_valued_conv_reference(x, weight_mask))
    np.testing.assert_allclose(np.asarray(out), np.asarray(ref), rtol=2e-4, atol=2e-4)
    assert out.shape == (B, C, D, H, W)

    print("KERNEL_OK")
</pallas_src>

<mosaic_0001>
module attributes {stable_mosaic.version = 11 : i64} {
  func.func @_mvc_kernel(%arg0: i32, %arg1: memref<1x8x512xf32, #tpu.memory_space<vmem>>, %arg2: memref<26x512xf32, #tpu.memory_space<vmem>>, %arg3: memref<26x8x8xf32, #tpu.memory_space<vmem>>, %arg4: memref<1x8x512xf32, #tpu.memory_space<vmem>>) attributes {dimension_semantics = [#tpu.dimension_semantics<parallel>], iteration_bounds = array<i64: 2>, scalar_prefetch = 0 : i64, scratch_operands = 0 : i64, tpu.core_type = #tpu.core_type<tc>, window_params = [{transform_indices = @transform_0, window_bounds = array<i64: 1, 8, 512>}, {pipeline_mode = #tpu.pipeline_mode<synchronous>, transform_indices = @transform_1, window_bounds = array<i64: 26, 512>}, {pipeline_mode = #tpu.pipeline_mode<synchronous>, transform_indices = @transform_2, window_bounds = array<i64: 26, 8, 8>}, {transform_indices = @transform_3, window_bounds = array<i64: 1, 8, 512>}]} {
    %c0 = arith.constant 0 : index
    %c0_0 = arith.constant 0 : index
    %c0_1 = arith.constant 0 : index
    %0 = vector.load %arg1[%c0, %c0_0, %c0_1] : memref<1x8x512xf32, #tpu.memory_space<vmem>>, vector<1x8x512xf32>
    %1 = vector.shape_cast %0 : vector<1x8x512xf32> to vector<8x512xf32>
    %2 = math.log %1 : vector<8x512xf32>
    %cst = arith.constant 0.000000e+00 : f32
    %3 = vector.broadcast %cst : f32 to vector<8x512xf32>
    %c73_i32 = arith.constant 73 : i32
    %4 = tpu.dynamic_rotate %2 by %c73_i32 dim 1 : vector<8x512xf32>, i32 -> vector<8x512xf32>
    %5 = arith.subf %4, %2 : vector<8x512xf32>
    %c0_2 = arith.constant 0 : index
    %c0_3 = arith.constant 0 : index
    %6 = vector.load %arg2[%c0_2, %c0_3] : memref<26x512xf32, #tpu.memory_space<vmem>>, vector<1x512xf32>
    %7 = vector.broadcast %6 : vector<1x512xf32> to vector<8x512xf32>
    %8 = arith.mulf %5, %7 : vector<8x512xf32>
    %c0_4 = arith.constant 0 : index
    %c0_5 = arith.constant 0 : index
    %c0_6 = arith.constant 0 : index
    %9 = vector.load %arg3[%c0_4, %c0_5, %c0_6] : memref<26x8x8xf32, #tpu.memory_space<vmem>>, vector<1x8x8xf32>
    %10 = vector.shape_cast %9 : vector<1x8x8xf32> to vector<8x8xf32>
    %cst_7 = arith.constant dense<0.000000e+00> : vector<8x512xf32>
    %11 = tpu.matmul %10, %8, %cst_7 {dimension_numbers = #tpu.dot_dimension_numbers<[1], [0], [0], [1], [0, 0, 1, 1], [], []>} : vector<8x8xf32>, vector<8x512xf32>, vector<8x512xf32> -> vector<8x512xf32>
    %12 = arith.addf %3, %11 : vector<8x512xf32>
    %c72_i32 = arith.constant 72 : i32
    %13 = tpu.dynamic_rotate %2 by %c72_i32 dim 1 : vector<8x512xf32>, i32 -> vector<8x512xf32>
    %14 = arith.subf %13, %2 : vector<8x512xf32>
    %c1 = arith.constant 1 : index
    %c0_8 = arith.constant 0 : index
    %15 = vector.load %arg2[%c1, %c0_8] : memref<26x512xf32, #tpu.memory_space<vmem>>, vector<1x512xf32>
    %16 = vector.broadcast %15 : vector<1x512xf32> to vector<8x512xf32>
    %17 = arith.mulf %14, %16 : vector<8x512xf32>
    %c1_9 = arith.constant 1 : index
    %c0_10 = arith.constant 0 : index
    %c0_11 = arith.constant 0 : index
    %18 = vector.load %arg3[%c1_9, %c0_10, %c0_11] : memref<26x8x8xf32, #tpu.memory_space<vmem>>, vector<1x8x8xf32>
    %19 = vector.shape_cast %18 : vector<1x8x8xf32> to vector<8x8xf32>
    %cst_12 = arith.constant dense<0.000000e+00> : vector<8x512xf32>
    %20 = tpu.matmul %19, %17, %cst_12 {dimension_numbers = #tpu.dot_dimension_numbers<[1], [0], [0], [1], [0, 0, 1, 1], [], []>} : vector<8x8xf32>, vector<8x512xf32>, vector<8x512xf32> -> vector<8x512xf32>
    %21 = arith.addf %12, %20 : vector<8x512xf32>
    %c71_i32 = arith.constant 71 : i32
    %22 = tpu.dynamic_rotate %2 by %c71_i32 dim 1 : vector<8x512xf32>, i32 -> vector<8x512xf32>
    %23 = arith.subf %22, %2 : vector<8x512xf32>
    %c2 = arith.constant 2 : index
    %c0_13 = arith.constant 0 : index
    %24 = vector.load %arg2[%c2, %c0_13] : memref<26x512xf32, #tpu.memory_space<vmem>>, vector<1x512xf32>
    %25 = vector.broadcast %24 : vector<1x512xf32> to vector<8x512xf32>
    %26 = arith.mulf %23, %25 : vector<8x512xf32>
    %c2_14 = arith.constant 2 : index
    %c0_15 = arith.constant 0 : index
    %c0_16 = arith.constant 0 : index
    %27 = vector.load %arg3[%c2_14, %c0_15, %c0_16] : memref<26x8x8xf32, #tpu.memory_space<vmem>>, vector<1x8x8xf32>
    %28 = vector.shape_cast %27 : vector<1x8x8xf32> to vector<8x8xf32>
    %cst_17 = arith.constant dense<0.000000e+00> : vector<8x512xf32>
    %29 = tpu.matmul %28, %26, %cst_17 {dimension_numbers = #tpu.dot_dimension_numbers<[1], [0], [0], [1], [0, 0, 1, 1], [], []>} : vector<8x8xf32>, vector<8x512xf32>, vector<8x512xf32> -> vector<8x512xf32>
    %30 = arith.addf %21, %29 : vector<8x512xf32>
    %c65_i32 = arith.constant 65 : i32
    %31 = tpu.dynamic_rotate %2 by %c65_i32 dim 1 : vector<8x512xf32>, i32 -> vector<8x512xf32>
    %32 = arith.subf %31, %2 : vector<8x512xf32>
    %c3 = arith.constant 3 : index
    %c0_18 = arith.constant 0 : index
    %33 = vector.load %arg2[%c3, %c0_18] : memref<26x512xf32, #tpu.memory_space<vmem>>, vector<1x512xf32>
    %34 = vector.broadcast %33 : vector<1x512xf32> to vector<8x512xf32>
    %35 = arith.mulf %32, %34 : vector<8x512xf32>
    %c3_19 = arith.constant 3 : index
    %c0_20 = arith.constant 0 : index
    %c0_21 = arith.constant 0 : index
    %36 = vector.load %arg3[%c3_19, %c0_20, %c0_21] : memref<26x8x8xf32, #tpu.memory_space<vmem>>, vector<1x8x8xf32>
    %37 = vector.shape_cast %36 : vector<1x8x8xf32> to vector<8x8xf32>
    %cst_22 = arith.constant dense<0.000000e+00> : vector<8x512xf32>
    %38 = tpu.matmul %37, %35, %cst_22 {dimension_numbers = #tpu.dot_dimension_numbers<[1], [0], [0], [1], [0, 0, 1, 1], [], []>} : vector<8x8xf32>, vector<8x512xf32>, vector<8x512xf32> -> vector<8x512xf32>
    %39 = arith.addf %30, %38 : vector<8x512xf32>
    %c64_i32 = arith.constant 64 : i32
    %40 = tpu.dynamic_rotate %2 by %c64_i32 dim 1 : vector<8x512xf32>, i32 -> vector<8x512xf32>
    %41 = arith.subf %40, %2 : vector<8x512xf32>
    %c4 = arith.constant 4 : index
    %c0_23 = arith.constant 0 : index
    %42 = vector.load %arg2[%c4, %c0_23] : memref<26x512xf32, #tpu.memory_space<vmem>>, vector<1x512xf32>
    %43 = vector.broadcast %42 : vector<1x512xf32> to vector<8x512xf32>
    %44 = arith.mulf %41, %43 : vector<8x512xf32>
    %c4_24 = arith.constant 4 : index
    %c0_25 = arith.constant 0 : index
    %c0_26 = arith.constant 0 : index
    %45 = vector.load %arg3[%c4_24, %c0_25, %c0_26] : memref<26x8x8xf32, #tpu.memory_space<vmem>>, vector<1x8x8xf32>
    %46 = vector.shape_cast %45 : vector<1x8x8xf32> to vector<8x8xf32>
    %cst_27 = arith.constant dense<0.000000e+00> : vector<8x512xf32>
    %47 = tpu.matmul %46, %44, %cst_27 {dimension_numbers = #tpu.dot_dimension_numbers<[1], [0], [0], [1], [0, 0, 1, 1], [], []>} : vector<8x8xf32>, vector<8x512xf32>, vector<8x512xf32> -> vector<8x512xf32>
    %48 = arith.addf %39, %47 : vector<8x512xf32>
    %c63_i32 = arith.constant 63 : i32
    %49 = tpu.dynamic_rotate %2 by %c63_i32 dim 1 : vector<8x512xf32>, i32 -> vector<8x512xf32>
    %50 = arith.subf %49, %2 : vector<8x512xf32>
    %c5 = arith.constant 5 : index
    %c0_28 = arith.constant 0 : index
    %51 = vector.load %arg2[%c5, %c0_28] : memref<26x512xf32, #tpu.memory_space<vmem>>, vector<1x512xf32>
    %52 = vector.broadcast %51 : vector<1x512xf32> to vector<8x512xf32>
    %53 = arith.mulf %50, %52 : vector<8x512xf32>
    %c5_29 = arith.constant 5 : index
    %c0_30 = arith.constant 0 : index
    %c0_31 = arith.constant 0 : index
    %54 = vector.load %arg3[%c5_29, %c0_30, %c0_31] : memref<26x8x8xf32, #tpu.memory_space<vmem>>, vector<1x8x8xf32>
    %55 = vector.shape_cast %54 : vector<1x8x8xf32> to vector<8x8xf32>
    %cst_32 = arith.constant dense<0.000000e+00> : vector<8x512xf32>
    %56 = tpu.matmul %55, %53, %cst_32 {dimension_numbers = #tpu.dot_dimension_numbers<[1], [0], [0], [1], [0, 0, 1, 1], [], []>} : vector<8x8xf32>, vector<8x512xf32>, vector<8x512xf32> -> vector<8x512xf32>
    %57 = arith.addf %48, %56 : vector<8x512xf32>
    %c57_i32 = arith.constant 57 : i32
    %58 = tpu.dynamic_rotate %2 by %c57_i32 dim 1 : vector<8x512xf32>, i32 -> vector<8x512xf32>
    %59 = arith.subf %58, %2 : vector<8x512xf32>
    %c6 = arith.constant 6 : index
    %c0_33 = arith.constant 0 : index
    %60 = vector.load %arg2[%c6, %c0_33] : memref<26x512xf32, #tpu.memory_space<vmem>>, vector<1x512xf32>
    %61 = vector.broadcast %60 : vector<1x512xf32> to vector<8x512xf32>
    %62 = arith.mulf %59, %61 : vector<8x512xf32>
    %c6_34 = arith.constant 6 : index
    %c0_35 = arith.constant 0 : index
    %c0_36 = arith.constant 0 : index
    %63 = vector.load %arg3[%c6_34, %c0_35, %c0_36] : memref<26x8x8xf32, #tpu.memory_space<vmem>>, vector<1x8x8xf32>
    %64 = vector.shape_cast %63 : vector<1x8x8xf32> to vector<8x8xf32>
    %cst_37 = arith.constant dense<0.000000e+00> : vector<8x512xf32>
    %65 = tpu.matmul %64, %62, %cst_37 {dimension_numbers = #tpu.dot_dimension_numbers<[1], [0], [0], [1], [0, 0, 1, 1], [], []>} : vector<8x8xf32>, vector<8x512xf32>, vector<8x512xf32> -> vector<8x512xf32>
    %66 = arith.addf %57, %65 : vector<8x512xf32>
    %c56_i32 = arith.constant 56 : i32
    %67 = tpu.dynamic_rotate %2 by %c56_i32 dim 1 : vector<8x512xf32>, i32 -> vector<8x512xf32>
    %68 = arith.subf %67, %2 : vector<8x512xf32>
    %c7 = arith.constant 7 : index
    %c0_38 = arith.constant 0 : index
    %69 = vector.load %arg2[%c7, %c0_38] : memref<26x512xf32, #tpu.memory_space<vmem>>, vector<1x512xf32>
    %70 = vector.broadcast %69 : vector<1x512xf32> to vector<8x512xf32>
    %71 = arith.mulf %68, %70 : vector<8x512xf32>
    %c7_39 = arith.constant 7 : index
    %c0_40 = arith.constant 0 : index
    %c0_41 = arith.constant 0 : index
    %72 = vector.load %arg3[%c7_39, %c0_40, %c0_41] : memref<26x8x8xf32, #tpu.memory_space<vmem>>, vector<1x8x8xf32>
    %73 = vector.shape_cast %72 : vector<1x8x8xf32> to vector<8x8xf32>
    %cst_42 = arith.constant dense<0.000000e+00> : vector<8x512xf32>
    %74 = tpu.matmul %73, %71, %cst_42 {dimension_numbers = #tpu.dot_dimension_numbers<[1], [0], [0], [1], [0, 0, 1, 1], [], []>} : vector<8x8xf32>, vector<8x512xf32>, vector<8x512xf32> -> vector<8x512xf32>
    %75 = arith.addf %66, %74 : vector<8x512xf32>
    %c55_i32 = arith.constant 55 : i32
    %76 = tpu.dynamic_rotate %2 by %c55_i32 dim 1 : vector<8x512xf32>, i32 -> vector<8x512xf32>
    %77 = arith.subf %76, %2 : vector<8x512xf32>
    %c8 = arith.constant 8 : index
    %c0_43 = arith.constant 0 : index
    %78 = vector.load %arg2[%c8, %c0_43] : memref<26x512xf32, #tpu.memory_space<vmem>>, vector<1x512xf32>
    %79 = vector.broadcast %78 : vector<1x512xf32> to vector<8x512xf32>
    %80 = arith.mulf %77, %79 : vector<8x512xf32>
    %c8_44 = arith.constant 8 : index
    %c0_45 = arith.constant 0 : index
    %c0_46 = arith.constant 0 : index
    %81 = vector.load %arg3[%c8_44, %c0_45, %c0_46] : memref<26x8x8xf32, #tpu.memory_space<vmem>>, vector<1x8x8xf32>
    %82 = vector.shape_cast %81 : vector<1x8x8xf32> to vector<8x8xf32>
    %cst_47 = arith.constant dense<0.000000e+00> : vector<8x512xf32>
    %83 = tpu.matmul %82, %80, %cst_47 {dimension_numbers = #tpu.dot_dimension_numbers<[1], [0], [0], [1], [0, 0, 1, 1], [], []>} : vector<8x8xf32>, vector<8x512xf32>, vector<8x512xf32> -> vector<8x512xf32>
    %84 = arith.addf %75, %83 : vector<8x512xf32>
    %c9_i32 = arith.constant 9 : i32
    %85 = tpu.dynamic_rotate %2 by %c9_i32 dim 1 : vector<8x512xf32>, i32 -> vector<8x512xf32>
    %86 = arith.subf %85, %2 : vector<8x512xf32>
    %c9 = arith.constant 9 : index
    %c0_48 = arith.constant 0 : index
    %87 = vector.load %arg2[%c9, %c0_48] : memref<26x512xf32, #tpu.memory_space<vmem>>, vector<1x512xf32>
    %88 = vector.broadcast %87 : vector<1x512xf32> to vector<8x512xf32>
    %89 = arith.mulf %86, %88 : vector<8x512xf32>
    %c9_49 = arith.constant 9 : index
    %c0_50 = arith.constant 0 : index
    %c0_51 = arith.constant 0 : index
    %90 = vector.load %arg3[%c9_49, %c0_50, %c0_51] : memref<26x8x8xf32, #tpu.memory_space<vmem>>, vector<1x8x8xf32>
    %91 = vector.shape_cast %90 : vector<1x8x8xf32> to vector<8x8xf32>
    %cst_52 = arith.constant dense<0.000000e+00> : vector<8x512xf32>
    %92 = tpu.matmul %91, %89, %cst_52 {dimension_numbers = #tpu.dot_dimension_numbers<[1], [0], [0], [1], [0, 0, 1, 1], [], []>} : vector<8x8xf32>, vector<8x512xf32>, vector<8x512xf32> -> vector<8x512xf32>
    %93 = arith.addf %84, %92 : vector<8x512xf32>
    %c8_i32 = arith.constant 8 : i32
    %94 = tpu.dynamic_rotate %2 by %c8_i32 dim 1 : vector<8x512xf32>, i32 -> vector<8x512xf32>
    %95 = arith.subf %94, %2 : vector<8x512xf32>
    %c10 = arith.constant 10 : index
    %c0_53 = arith.constant 0 : index
    %96 = vector.load %arg2[%c10, %c0_53] : memref<26x512xf32, #tpu.memory_space<vmem>>, vector<1x512xf32>
    %97 = vector.broadcast %96 : vector<1x512xf32> to vector<8x512xf32>
    %98 = arith.mulf %95, %97 : vector<8x512xf32>
    %c10_54 = arith.constant 10 : index
    %c0_55 = arith.constant 0 : index
    %c0_56 = arith.constant 0 : index
    %99 = vector.load %arg3[%c10_54, %c0_55, %c0_56] : memref<26x8x8xf32, #tpu.memory_space<vmem>>, vector<1x8x8xf32>
    %100 = vector.shape_cast %99 : vector<1x8x8xf32> to vector<8x8xf32>
    %cst_57 = arith.constant dense<0.000000e+00> : vector<8x512xf32>
    %101 = tpu.matmul %100, %98, %cst_57 {dimension_numbers = #tpu.dot_dimension_numbers<[1], [0], [0], [1], [0, 0, 1, 1], [], []>} : vector<8x8xf32>, vector<8x512xf32>, vector<8x512xf32> -> vector<8x512xf32>
    %102 = arith.addf %93, %101 : vector<8x512xf32>
    %c7_i32 = arith.constant 7 : i32
    %103 = tpu.dynamic_rotate %2 by %c7_i32 dim 1 : vector<8x512xf32>, i32 -> vector<8x512xf32>
    %104 = arith.subf %103, %2 : vector<8x512xf32>
    %c11 = arith.constant 11 : index
    %c0_58 = arith.constant 0 : index
    %105 = vector.load %arg2[%c11, %c0_58] : memref<26x512xf32, #tpu.memory_space<vmem>>, vector<1x512xf32>
    %106 = vector.broadcast %105 : vector<1x512xf32> to vector<8x512xf32>
    %107 = arith.mulf %104, %106 : vector<8x512xf32>
    %c11_59 = arith.constant 11 : index
    %c0_60 = arith.constant 0 : index
    %c0_61 = arith.constant 0 : index
    %108 = vector.load %arg3[%c11_59, %c0_60, %c0_61] : memref<26x8x8xf32, #tpu.memory_space<vmem>>, vector<1x8x8xf32>
    %109 = vector.shape_cast %108 : vector<1x8x8xf32> to vector<8x8xf32>
    %cst_62 = arith.constant dense<0.000000e+00> : vector<8x512xf32>
    %110 = tpu.matmul %109, %107, %cst_62 {dimension_numbers = #tpu.dot_dimension_numbers<[1], [0], [0], [1], [0, 0, 1, 1], [], []>} : vector<8x8xf32>, vector<8x512xf32>, vector<8x512xf32> -> vector<8x512xf32>
    %111 = arith.addf %102, %110 : vector<8x512xf32>
    %c1_i32 = arith.constant 1 : i32
    %112 = tpu.dynamic_rotate %2 by %c1_i32 dim 1 : vector<8x512xf32>, i32 -> vector<8x512xf32>
    %113 = arith.subf %112, %2 : vector<8x512xf32>
    %c12 = arith.constant 12 : index
    %c0_63 = arith.constant 0 : index
    %114 = vector.load %arg2[%c12, %c0_63] : memref<26x512xf32, #tpu.memory_space<vmem>>, vector<1x512xf32>
    %115 = vector.broadcast %114 : vector<1x512xf32> to vector<8x512xf32>
    %116 = arith.mulf %113, %115 : vector<8x512xf32>
    %c12_64 = arith.constant 12 : index
    %c0_65 = arith.constant 0 : index
    %c0_66 = arith.constant 0 : index
    %117 = vector.load %arg3[%c12_64, %c0_65, %c0_66] : memref<26x8x8xf32, #tpu.memory_space<vmem>>, vector<1x8x8xf32>
    %118 = vector.shape_cast %117 : vector<1x8x8xf32> to vector<8x8xf32>
    %cst_67 = arith.constant dense<0.000000e+00> : vector<8x512xf32>
    %119 = tpu.matmul %118, %116, %cst_67 {dimension_numbers = #tpu.dot_dimension_numbers<[1], [0], [0], [1], [0, 0, 1, 1], [], []>} : vector<8x8xf32>, vector<8x512xf32>, vector<8x512xf32> -> vector<8x512xf32>
    %120 = arith.addf %111, %119 : vector<8x512xf32>
    %c511_i32 = arith.constant 511 : i32
    %121 = tpu.dynamic_rotate %2 by %c511_i32 dim 1 : vector<8x512xf32>, i32 -> vector<8x512xf32>
    %122 = arith.subf %121, %2 : vector<8x512xf32>
    %c13 = arith.constant 13 : index
    %c0_68 = arith.constant 0 : index
    %123 = vector.load %arg2[%c13, %c0_68] : memref<26x512xf32, #tpu.memory_space<vmem>>, vector<1x512xf32>
    %124 = vector.broadcast %123 : vector<1x512xf32> to vector<8x512xf32>
    %125 = arith.mulf %122, %124 : vector<8x512xf32>
    %c13_69 = arith.constant 13 : index
    %c0_70 = arith.constant 0 : index
    %c0_71 = arith.constant 0 : index
    %126 = vector.load %arg3[%c13_69, %c0_70, %c0_71] : memref<26x8x8xf32, #tpu.memory_space<vmem>>, vector<1x8x8xf32>
    %127 = vector.shape_cast %126 : vector<1x8x8xf32> to vector<8x8xf32>
    %cst_72 = arith.constant dense<0.000000e+00> : vector<8x512xf32>
    %128 = tpu.matmul %127, %125, %cst_72 {dimension_numbers = #tpu.dot_dimension_numbers<[1], [0], [0], [1], [0, 0, 1, 1], [], []>} : vector<8x8xf32>, vector<8x512xf32>, vector<8x512xf32> -> vector<8x512xf32>
    %129 = arith.addf %120, %128 : vector<8x512xf32>
    %c505_i32 = arith.constant 505 : i32
    %130 = tpu.dynamic_rotate %2 by %c505_i32 dim 1 : vector<8x512xf32>, i32 -> vector<8x512xf32>
    %131 = arith.subf %130, %2 : vector<8x512xf32>
    %c14 = arith.constant 14 : index
    %c0_73 = arith.constant 0 : index
    %132 = vector.load %arg2[%c14, %c0_73] : memref<26x512xf32, #tpu.memory_space<vmem>>, vector<1x512xf32>
    %133 = vector.broadcast %132 : vector<1x512xf32> to vector<8x512xf32>
    %134 = arith.mulf %131, %133 : vector<8x512xf32>
    %c14_74 = arith.constant 14 : index
    %c0_75 = arith.constant 0 : index
    %c0_76 = arith.constant 0 : index
    %135 = vector.load %arg3[%c14_74, %c0_75, %c0_76] : memref<26x8x8xf32, #tpu.memory_space<vmem>>, vector<1x8x8xf32>
    %136 = vector.shape_cast %135 : vector<1x8x8xf32> to vector<8x8xf32>
    %cst_77 = arith.constant dense<0.000000e+00> : vector<8x512xf32>
    %137 = tpu.matmul %136, %134, %cst_77 {dimension_numbers = #tpu.dot_dimension_numbers<[1], [0], [0], [1], [0, 0, 1, 1], [], []>} : vector<8x8xf32>, vector<8x512xf32>, vector<8x512xf32> -> vector<8x512xf32>
    %138 = arith.addf %129, %137 : vector<8x512xf32>
    %c504_i32 = arith.constant 504 : i32
    %139 = tpu.dynamic_rotate %2 by %c504_i32 dim 1 : vector<8x512xf32>, i32 -> vector<8x512xf32>
    %140 = arith.subf %139, %2 : vector<8x512xf32>
    %c15 = arith.constant 15 : index
    %c0_78 = arith.constant 0 : index
    %141 = vector.load %arg2[%c15, %c0_78] : memref<26x512xf32, #tpu.memory_space<vmem>>, vector<1x512xf32>
    %142 = vector.broadcast %141 : vector<1x512xf32> to vector<8x512xf32>
    %143 = arith.mulf %140, %142 : vector<8x512xf32>
    %c15_79 = arith.constant 15 : index
    %c0_80 = arith.constant 0 : index
    %c0_81 = arith.constant 0 : index
    %144 = vector.load %arg3[%c15_79, %c0_80, %c0_81] : memref<26x8x8xf32, #tpu.memory_space<vmem>>, vector<1x8x8xf32>
    %145 = vector.shape_cast %144 : vector<1x8x8xf32> to vector<8x8xf32>
    %cst_82 = arith.constant dense<0.000000e+00> : vector<8x512xf32>
    %146 = tpu.matmul %145, %143, %cst_82 {dimension_numbers = #tpu.dot_dimension_numbers<[1], [0], [0], [1], [0, 0, 1, 1], [], []>} : vector<8x8xf32>, vector<8x512xf32>, vector<8x512xf32> -> vector<8x512xf32>
    %147 = arith.addf %138, %146 : vector<8x512xf32>
    %c503_i32 = arith.constant 503 : i32
    %148 = tpu.dynamic_rotate %2 by %c503_i32 dim 1 : vector<8x512xf32>, i32 -> vector<8x512xf32>
    %149 = arith.subf %148, %2 : vector<8x512xf32>
    %c16 = arith.constant 16 : index
    %c0_83 = arith.constant 0 : index
    %150 = vector.load %arg2[%c16, %c0_83] : memref<26x512xf32, #tpu.memory_space<vmem>>, vector<1x512xf32>
    %151 = vector.broadcast %150 : vector<1x512xf32> to vector<8x512xf32>
    %152 = arith.mulf %149, %151 : vector<8x512xf32>
    %c16_84 = arith.constant 16 : index
    %c0_85 = arith.constant 0 : index
    %c0_86 = arith.constant 0 : index
    %153 = vector.load %arg3[%c16_84, %c0_85, %c0_86] : memref<26x8x8xf32, #tpu.memory_space<vmem>>, vector<1x8x8xf32>
    %154 = vector.shape_cast %153 : vector<1x8x8xf32> to vector<8x8xf32>
    %cst_87 = arith.constant dense<0.000000e+00> : vector<8x512xf32>
    %155 = tpu.matmul %154, %152, %cst_87 {dimension_numbers = #tpu.dot_dimension_numbers<[1], [0], [0], [1], [0, 0, 1, 1], [], []>} : vector<8x8xf32>, vector<8x512xf32>, vector<8x512xf32> -> vector<8x512xf32>
    %156 = arith.addf %147, %155 : vector<8x512xf32>
    %c457_i32 = arith.constant 457 : i32
    %157 = tpu.dynamic_rotate %2 by %c457_i32 dim 1 : vector<8x512xf32>, i32 -> vector<8x512xf32>
    %158 = arith.subf %157, %2 : vector<8x512xf32>
    %c17 = arith.constant 17 : index
    %c0_88 = arith.constant 0 : index
    %159 = vector.load %arg2[%c17, %c0_88] : memref<26x512xf32, #tpu.memory_space<vmem>>, vector<1x512xf32>
    %160 = vector.broadcast %159 : vector<1x512xf32> to vector<8x512xf32>
    %161 = arith.mulf %158, %160 : vector<8x512xf32>
    %c17_89 = arith.constant 17 : index
    %c0_90 = arith.constant 0 : index
    %c0_91 = arith.constant 0 : index
    %162 = vector.load %arg3[%c17_89, %c0_90, %c0_91] : memref<26x8x8xf32, #tpu.memory_space<vmem>>, vector<1x8x8xf32>
    %163 = vector.shape_cast %162 : vector<1x8x8xf32> to vector<8x8xf32>
    %cst_92 = arith.constant dense<0.000000e+00> : vector<8x512xf32>
    %164 = tpu.matmul %163, %161, %cst_92 {dimension_numbers = #tpu.dot_dimension_numbers<[1], [0], [0], [1], [0, 0, 1, 1], [], []>} : vector<8x8xf32>, vector<8x512xf32>, vector<8x512xf32> -> vector<8x512xf32>
    %165 = arith.addf %156, %164 : vector<8x512xf32>
    %c456_i32 = arith.constant 456 : i32
    %166 = tpu.dynamic_rotate %2 by %c456_i32 dim 1 : vector<8x512xf32>, i32 -> vector<8x512xf32>
    %167 = arith.subf %166, %2 : vector<8x512xf32>
    %c18 = arith.constant 18 : index
    %c0_93 = arith.constant 0 : index
    %168 = vector.load %arg2[%c18, %c0_93] : memref<26x512xf32, #tpu.memory_space<vmem>>, vector<1x512xf32>
    %169 = vector.broadcast %168 : vector<1x512xf32> to vector<8x512xf32>
    %170 = arith.mulf %167, %169 : vector<8x512xf32>
    %c18_94 = arith.constant 18 : index
    %c0_95 = arith.constant 0 : index
    %c0_96 = arith.constant 0 : index
    %171 = vector.load %arg3[%c18_94, %c0_95, %c0_96] : memref<26x8x8xf32, #tpu.memory_space<vmem>>, vector<1x8x8xf32>
    %172 = vector.shape_cast %171 : vector<1x8x8xf32> to vector<8x8xf32>
    %cst_97 = arith.constant dense<0.000000e+00> : vector<8x512xf32>
    %173 = tpu.matmul %172, %170, %cst_97 {dimension_numbers = #tpu.dot_dimension_numbers<[1], [0], [0], [1], [0, 0, 1, 1], [], []>} : vector<8x8xf32>, vector<8x512xf32>, vector<8x512xf32> -> vector<8x512xf32>
    %174 = arith.addf %165, %173 : vector<8x512xf32>
    %c455_i32 = arith.constant 455 : i32
    %175 = tpu.dynamic_rotate %2 by %c455_i32 dim 1 : vector<8x512xf32>, i32 -> vector<8x512xf32>
    %176 = arith.subf %175, %2 : vector<8x512xf32>
    %c19 = arith.constant 19 : index
    %c0_98 = arith.constant 0 : index
    %177 = vector.load %arg2[%c19, %c0_98] : memref<26x512xf32, #tpu.memory_space<vmem>>, vector<1x512xf32>
    %178 = vector.broadcast %177 : vector<1x512xf32> to vector<8x512xf32>
    %179 = arith.mulf %176, %178 : vector<8x512xf32>
    %c19_99 = arith.constant 19 : index
    %c0_100 = arith.constant 0 : index
    %c0_101 = arith.constant 0 : index
    %180 = vector.load %arg3[%c19_99, %c0_100, %c0_101] : memref<26x8x8xf32, #tpu.memory_space<vmem>>, vector<1x8x8xf32>
    %181 = vector.shape_cast %180 : vector<1x8x8xf32> to vector<8x8xf32>
    %cst_102 = arith.constant dense<0.000000e+00> : vector<8x512xf32>
    %182 = tpu.matmul %181, %179, %cst_102 {dimension_numbers = #tpu.dot_dimension_numbers<[1], [0], [0], [1], [0, 0, 1, 1], [], []>} : vector<8x8xf32>, vector<8x512xf32>, vector<8x512xf32> -> vector<8x512xf32>
    %183 = arith.addf %174, %182 : vector<8x512xf32>
    %c449_i32 = arith.constant 449 : i32
    %184 = tpu.dynamic_rotate %2 by %c449_i32 dim 1 : vector<8x512xf32>, i32 -> vector<8x512xf32>
    %185 = arith.subf %184, %2 : vector<8x512xf32>
    %c20 = arith.constant 20 : index
    %c0_103 = arith.constant 0 : index
    %186 = vector.load %arg2[%c20, %c0_103] : memref<26x512xf32, #tpu.memory_space<vmem>>, vector<1x512xf32>
    %187 = vector.broadcast %186 : vector<1x512xf32> to vector<8x512xf32>
    %188 = arith.mulf %185, %187 : vector<8x512xf32>
    %c20_104 = arith.constant 20 : index
    %c0_105 = arith.constant 0 : index
    %c0_106 = arith.constant 0 : index
    %189 = vector.load %arg3[%c20_104, %c0_105, %c0_106] : memref<26x8x8xf32, #tpu.memory_space<vmem>>, vector<1x8x8xf32>
    %190 = vector.shape_cast %189 : vector<1x8x8xf32> to vector<8x8xf32>
    %cst_107 = arith.constant dense<0.000000e+00> : vector<8x512xf32>
    %191 = tpu.matmul %190, %188, %cst_107 {dimension_numbers = #tpu.dot_dimension_numbers<[1], [0], [0], [1], [0, 0, 1, 1], [], []>} : vector<8x8xf32>, vector<8x512xf32>, vector<8x512xf32> -> vector<8x512xf32>
    %192 = arith.addf %183, %191 : vector<8x512xf32>
    %c448_i32 = arith.constant 448 : i32
    %193 = tpu.dynamic_rotate %2 by %c448_i32 dim 1 : vector<8x512xf32>, i32 -> vector<8x512xf32>
    %194 = arith.subf %193, %2 : vector<8x512xf32>
    %c21 = arith.constant 21 : index
    %c0_108 = arith.constant 0 : index
    %195 = vector.load %arg2[%c21, %c0_108] : memref<26x512xf32, #tpu.memory_space<vmem>>, vector<1x512xf32>
    %196 = vector.broadcast %195 : vector<1x512xf32> to vector<8x512xf32>
    %197 = arith.mulf %194, %196 : vector<8x512xf32>
    %c21_109 = arith.constant 21 : index
    %c0_110 = arith.constant 0 : index
    %c0_111 = arith.constant 0 : index
    %198 = vector.load %arg3[%c21_109, %c0_110, %c0_111] : memref<26x8x8xf32, #tpu.memory_space<vmem>>, vector<1x8x8xf32>
    %199 = vector.shape_cast %198 : vector<1x8x8xf32> to vector<8x8xf32>
    %cst_112 = arith.constant dense<0.000000e+00> : vector<8x512xf32>
    %200 = tpu.matmul %199, %197, %cst_112 {dimension_numbers = #tpu.dot_dimension_numbers<[1], [0], [0], [1], [0, 0, 1, 1], [], []>} : vector<8x8xf32>, vector<8x512xf32>, vector<8x512xf32> -> vector<8x512xf32>
    %201 = arith.addf %192, %200 : vector<8x512xf32>
    %c447_i32 = arith.constant 447 : i32
    %202 = tpu.dynamic_rotate %2 by %c447_i32 dim 1 : vector<8x512xf32>, i32 -> vector<8x512xf32>
    %203 = arith.subf %202, %2 : vector<8x512xf32>
    %c22 = arith.constant 22 : index
    %c0_113 = arith.constant 0 : index
    %204 = vector.load %arg2[%c22, %c0_113] : memref<26x512xf32, #tpu.memory_space<vmem>>, vector<1x512xf32>
    %205 = vector.broadcast %204 : vector<1x512xf32> to vector<8x512xf32>
    %206 = arith.mulf %203, %205 : vector<8x512xf32>
    %c22_114 = arith.constant 22 : index
    %c0_115 = arith.constant 0 : index
    %c0_116 = arith.constant 0 : index
    %207 = vector.load %arg3[%c22_114, %c0_115, %c0_116] : memref<26x8x8xf32, #tpu.memory_space<vmem>>, vector<1x8x8xf32>
    %208 = vector.shape_cast %207 : vector<1x8x8xf32> to vector<8x8xf32>
    %cst_117 = arith.constant dense<0.000000e+00> : vector<8x512xf32>
    %209 = tpu.matmul %208, %206, %cst_117 {dimension_numbers = #tpu.dot_dimension_numbers<[1], [0], [0], [1], [0, 0, 1, 1], [], []>} : vector<8x8xf32>, vector<8x512xf32>, vector<8x512xf32> -> vector<8x512xf32>
    %210 = arith.addf %201, %209 : vector<8x512xf32>
    %c441_i32 = arith.constant 441 : i32
    %211 = tpu.dynamic_rotate %2 by %c441_i32 dim 1 : vector<8x512xf32>, i32 -> vector<8x512xf32>
    %212 = arith.subf %211, %2 : vector<8x512xf32>
    %c23 = arith.constant 23 : index
    %c0_118 = arith.constant 0 : index
    %213 = vector.load %arg2[%c23, %c0_118] : memref<26x512xf32, #tpu.memory_space<vmem>>, vector<1x512xf32>
    %214 = vector.broadcast %213 : vector<1x512xf32> to vector<8x512xf32>
    %215 = arith.mulf %212, %214 : vector<8x512xf32>
    %c23_119 = arith.constant 23 : index
    %c0_120 = arith.constant 0 : index
    %c0_121 = arith.constant 0 : index
    %216 = vector.load %arg3[%c23_119, %c0_120, %c0_121] : memref<26x8x8xf32, #tpu.memory_space<vmem>>, vector<1x8x8xf32>
    %217 = vector.shape_cast %216 : vector<1x8x8xf32> to vector<8x8xf32>
    %cst_122 = arith.constant dense<0.000000e+00> : vector<8x512xf32>
    %218 = tpu.matmul %217, %215, %cst_122 {dimension_numbers = #tpu.dot_dimension_numbers<[1], [0], [0], [1], [0, 0, 1, 1], [], []>} : vector<8x8xf32>, vector<8x512xf32>, vector<8x512xf32> -> vector<8x512xf32>
    %219 = arith.addf %210, %218 : vector<8x512xf32>
    %c440_i32 = arith.constant 440 : i32
    %220 = tpu.dynamic_rotate %2 by %c440_i32 dim 1 : vector<8x512xf32>, i32 -> vector<8x512xf32>
    %221 = arith.subf %220, %2 : vector<8x512xf32>
    %c24 = arith.constant 24 : index
    %c0_123 = arith.constant 0 : index
    %222 = vector.load %arg2[%c24, %c0_123] : memref<26x512xf32, #tpu.memory_space<vmem>>, vector<1x512xf32>
    %223 = vector.broadcast %222 : vector<1x512xf32> to vector<8x512xf32>
    %224 = arith.mulf %221, %223 : vector<8x512xf32>
    %c24_124 = arith.constant 24 : index
    %c0_125 = arith.constant 0 : index
    %c0_126 = arith.constant 0 : index
    %225 = vector.load %arg3[%c24_124, %c0_125, %c0_126] : memref<26x8x8xf32, #tpu.memory_space<vmem>>, vector<1x8x8xf32>
    %226 = vector.shape_cast %225 : vector<1x8x8xf32> to vector<8x8xf32>
    %cst_127 = arith.constant dense<0.000000e+00> : vector<8x512xf32>
    %227 = tpu.matmul %226, %224, %cst_127 {dimension_numbers = #tpu.dot_dimension_numbers<[1], [0], [0], [1], [0, 0, 1, 1], [], []>} : vector<8x8xf32>, vector<8x512xf32>, vector<8x512xf32> -> vector<8x512xf32>
    %228 = arith.addf %219, %227 : vector<8x512xf32>
    %c439_i32 = arith.constant 439 : i32
    %229 = tpu.dynamic_rotate %2 by %c439_i32 dim 1 : vector<8x512xf32>, i32 -> vector<8x512xf32>
    %230 = arith.subf %229, %2 : vector<8x512xf32>
    %c25 = arith.constant 25 : index
    %c0_128 = arith.constant 0 : index
    %231 = vector.load %arg2[%c25, %c0_128] : memref<26x512xf32, #tpu.memory_space<vmem>>, vector<1x512xf32>
    %232 = vector.broadcast %231 : vector<1x512xf32> to vector<8x512xf32>
    %233 = arith.mulf %230, %232 : vector<8x512xf32>
    %c25_129 = arith.constant 25 : index
    %c0_130 = arith.constant 0 : index
    %c0_131 = arith.constant 0 : index
    %234 = vector.load %arg3[%c25_129, %c0_130, %c0_131] : memref<26x8x8xf32, #tpu.memory_space<vmem>>, vector<1x8x8xf32>
    %235 = vector.shape_cast %234 : vector<1x8x8xf32> to vector<8x8xf32>
    %cst_132 = arith.constant dense<0.000000e+00> : vector<8x512xf32>
    %236 = tpu.matmul %235, %233, %cst_132 {dimension_numbers = #tpu.dot_dimension_numbers<[1], [0], [0], [1], [0, 0, 1, 1], [], []>} : vector<8x8xf32>, vector<8x512xf32>, vector<8x512xf32> -> vector<8x512xf32>
    %237 = arith.addf %228, %236 : vector<8x512xf32>
    %c0_133 = arith.constant 0 : index
    %c0_134 = arith.constant 0 : index
    %c0_135 = arith.constant 0 : index
    %238 = vector.load %arg1[%c0_133, %c0_134, %c0_135] : memref<1x8x512xf32, #tpu.memory_space<vmem>>, vector<1x8x512xf32>
    %239 = vector.shape_cast %238 : vector<1x8x512xf32> to vector<8x512xf32>
    %240 = math.exp %237 : vector<8x512xf32>
    %241 = arith.mulf %239, %240 : vector<8x512xf32>
    %c0_136 = arith.constant 0 : index
    %c0_137 = arith.constant 0 : index
    %c0_138 = arith.constant 0 : index
    %242 = vector.load %arg4[%c0_136, %c0_137, %c0_138] : memref<1x8x512xf32, #tpu.memory_space<vmem>>, vector<1x8x512xf32>
    %243 = vector.shape_cast %242 : vector<1x8x512xf32> to vector<8x512xf32>
    %244 = vector.shape_cast %241 : vector<8x512xf32> to vector<1x8x512xf32>
    tpu.vector_store %arg4[%c0_136, %c0_137, %c0_138], %244 {strides = array<i32>} : memref<1x8x512xf32, #tpu.memory_space<vmem>>, vector<1x8x512xf32>,
    return
  }
  func.func @transform_0(%arg0: i32) -> (i32, i32, i32) {
    %c0_i32 = arith.constant 0 : i32
    %c0_i32_0 = arith.constant 0 : i32
    %c0_i32_1 = arith.constant 0 : i32
    return %arg0, %c0_i32, %c0_i32_0 : i32, i32, i32
  }
  func.func @transform_1(%arg0: i32) -> (i32, i32) {
    %c0_i32 = arith.constant 0 : i32
    %c0_i32_0 = arith.constant 0 : i32
    %c0_i32_1 = arith.constant 0 : i32
    return %c0_i32, %c0_i32_0 : i32, i32
  }
  func.func @transform_2(%arg0: i32) -> (i32, i32, i32) {
    %c0_i32 = arith.constant 0 : i32
    %c0_i32_0 = arith.constant 0 : i32
    %c0_i32_1 = arith.constant 0 : i32
    %c0_i32_2 = arith.constant 0 : i32
    return %c0_i32, %c0_i32_0, %c0_i32_1 : i32, i32, i32
  }
  func.func @transform_3(%arg0: i32) -> (i32, i32, i32) {
    %c0_i32 = arith.constant 0 : i32
    %c0_i32_0 = arith.constant 0 : i32
    %c0_i32_1 = arith.constant 0 : i32
    return %arg0, %c0_i32, %c0_i32_0 : i32, i32, i32
  }
}

</mosaic_0001>

<bundles_post_ra>
// kernel: tpu_custom_call.1
= control target key start
LH: loop header
LB: loop body
LE: loop exit
PB: predicated region body
PF: predicated region fallthrough
CT: control target
= control target key end

     0   :  { %8 = vsyncpa [#allocation3], 0  ;;  %s6580_s0 = inlined_call_operand.vmem [shape: f32[2,8,512], index: 0, kind: input, shape index: {}]   ;;  %s6581_s1 = inlined_call_operand.vmem [shape: f32[26,512], index: 1, kind: input, shape index: {}]   ;;  %s6582_s2 = inlined_call_operand.vmem [shape: f32[26,8,8], index: 2, kind: input, shape index: {}]   ;;  %s6583_s3 = inlined_call_operand.hbm [shape: f32[2,8,512], index: 3, kind: output, shape index: {}]  }
   0x1   :  { %10 = vsyncpa [#allocation3 + $0x1], 0  ;;  %s5613_s12 = smov 0   ;;  %s5615_s13 = smov 0  }
   0x2   :  { %s5617_s14 = smov 0   ;;  %s5619_s15 = smov 0  }
   0x3 LB: > { %s5634_s16 = sadd.s32 4294967295, %s5572_s15   ;;  %s5217_s17 = sadd.s32 4294967294, %s5572_s15   ;;  %s5572_s15 = sphi %s5619_s15, %s6604_s15   ;;  %s5568_s14 = sphi %s5617_s14, %s6603_s14   ;;  %s5564_s13 = sphi %s5615_s13, %s6602_s13   ;;  %s5560_s12 = sphi %s5613_s12, %s6601_s12  }
   0x4   : > { %s5638_s18 = sadd.s32 1, %s5572_s15   ;;  %s91_s19 = sadd.s32 1, %s5568_s14 }
   0x5   : > { %s88_s20 = ssub.s32 %s5572_s15, %s5638_s18  ;;  %p101_p0 = scmp.ne.s32.totalorder %s5568_s14, %s5564_s13 }
   0x6   : > { %p89_p1 = scmp.eq.s32.totalorder %s88_s20, 0  ;;  %p102_p2 = scmp.eq.s32.totalorder %s5634_s16, 1 }
   0x7   : > { %p107_p3 = scmp.ne.s32.totalorder %s5564_s13, %s5560_s12  ;;  %p108_p4 = scmp.eq.s32.totalorder %s5217_s17, 1 }
   0x8   : > { %s5649_s21 = scalar_select %p89_p1, %s5568_s14, %s91_s19  }
   0x9   : > { %p5651_p5 = por %p102_p2, %p101_p0  ;;  %p5655_p6 = por %p108_p4, %p107_p3 }
   0xa   : > { %p5220_p7 = scmp.ge.s32.totalorder %s5572_s15, 1  ;;  %p140_p8 = scmp.lt.s32.totalorder %s5572_s15, 3 }
   0xc   : > { %p141_p9 = pnand %p5220_p7, %p140_p8 }
   0xe   : > { %144 = sbr.rel (%p141_p9) target bundleno = 612 (0x264), region = 32 }
  0x15   : > { %p164_p10 = scmp.lt.s32.totalorder %s5634_s16, 1  ;;  %v6588_v9 = vmov 0.0   ;;  %s5575_s29 = smov 72   ;;  %v189_v13 = vlaneseq  ;;  %v5224_v21 = vld [vmem:[%s6581_s1 + $0x1] ss:$8 sm:$0xf] }
  0x16   : > { %341 = vmatprep.mubr.f32.mxu0 %v6588_v9  ;;  %412 = vmatprep.mubr.f32.mxu1 %v6588_v9  ;;  %s5576_s30 = smov 73   ;;  %s5577_s4 = smov 71   ;;  %v200_v33 = vld [vmem:[%s6581_s1] ss:$8 sm:$0xf]  ;;  %vm273_vm2 = vcmask 64512  }
  0x17   : > { %s165_s24 = scalar_select %p164_p10, %s5634_s16, 1  ;;  %v203_v14 = vshrl.u32 %v189_v13, 7  ;;  %v5739_v15 = vand.u32 127, %v189_v13  ;;  %v5225_v46 = vld [vmem:[%s6582_s2 + $0x8] sm:$0xff] }
  0x18   : > { %s5578_s5 = smov 65   ;;  %s5579_s6 = smov 64   ;;  %v5230_v58 = vld [vmem:[%s6581_s1 + $0x2] ss:$8 sm:$0xf] }
  0x19   : > { %s5331_s25 = sshll.u32 %s165_s24, 5  ;;  %s5580_s7 = smov 63   ;;  %v5742_v17 = vsub.s32 3, %v203_v14  ;;  %v5744_v19 = vsub.s32 2, %v203_v14  ;;  %v5746_v20 = vsub.s32 0, %v203_v14  ;;  %vm235_vm0 = vcmp.lt.s32.totalorder %v5739_v15, 72 }
  0x1a   : > { %s5666_s28 = scalar_lea.vmem %s6580_s0, %s5331_s25  ;;  %s5581_s8 = smov 57   ;;  %v5753_v22 = vsub.s32 1, %v203_v14  ;;  %vm191_vm1 = vcmp.lt.s32.totalorder %v5739_v15, 73  ;;  %vm572_vm3 = vcmp.lt.s32.totalorder %v5739_v15, 71  ;;  %vm767_vm4 = vcmp.lt.s32.totalorder %v5739_v15, 65 }
  0x1b   : > { %v171_v0 = vld [vmem:[%s5666_s28 + $0x10] sm:$0xff]  ;;  %v169_v1 = vld [vmem:[%s5666_s28] sm:$0xff]  ;;  %v172_v2 = vld [vmem:[%s5666_s28 + $0x18] sm:$0xff]  ;;  %s5582_s9 = smov 56   ;;  %s5583_s10 = smov 55   ;;  %v262_v24 = vrot.slane %v5224_v21, %v5742_v17  ;;  %v250_v28 = vrot.slane %v5224_v21, %v5746_v20  ;;  %v258_v29 = vrot.slane %v5224_v21, %v5744_v19  ;;  %v205_v48 = vrot.slane %v200_v33, %v5746_v20 }
  0x1c   : > { %5490 = vlog2.f32 %v171_v0  ;;  %v170_v3 = vld [vmem:[%s5666_s28 + $0x8] sm:$0xff]  ;;  %s5584_s11 = smov 9   ;;  %s5585_s17 = smov 8   ;;  %v254_v32 = vrot.slane %v5224_v21, %v5753_v22  ;;  %v209_v43 = vrot.slane %v200_v33, %v5753_v22  ;;  %v213_v50 = vrot.slane %v200_v33, %v5744_v19 }
  0x1d   : > { %5492 = vlog2.f32 %v169_v1  ;;  %s5586_s19 = smov 7   ;;  %s5587_s20 = smov 1   ;;  %v217_v54 = vrot.slane %v200_v33, %v5742_v17  ;;  %v595_v14 = vrot.slane %v5230_v58, %v5744_v19  ;;  %v599_v21 = vrot.slane %v5230_v58, %v5742_v17 }
  0x1e   : > { %5494 = vlog2.f32 %v172_v2  ;;  %s5588_s24 = smov 127   ;;  %s5589_s25 = smov 121   ;;  %v591_v2 = vrot.slane %v5230_v58, %v5753_v22  ;;  %vm962_vm5 = vcmp.lt.s32.totalorder %v5739_v15, 64  ;;  %vm1157_vm6 = vcmp.lt.s32.totalorder %v5739_v15, 63 }
  0x1f   : > { %5496 = vlog2.f32 %v170_v3  ;;  %vm1352_vm7 = vcmp.lt.s32.totalorder %v5739_v15, 57  ;;  %vm1547_vm8 = vcmp.lt.s32.totalorder %v5739_v15, 56  ;;  %vm1742_vm9 = vcmp.lt.s32.totalorder %v5739_v15, 55 }
  0x20   : > { %vm1937_vm10 = vcmp.lt.s32.totalorder %v5739_v15, 9  ;;  %vm2132_vm11 = vcmp.lt.s32.totalorder %v5739_v15, 8  ;;  %vm2327_vm12 = vcmp.lt.s32.totalorder %v5739_v15, 7  ;;  %vm2522_vm13 = vcmp.lt.s32.totalorder %v5739_v15, 1 }
  0x21   : > { %vm2717_vm14 = vcmp.lt.s32.totalorder %v5739_v15, 127  ;;  %vm2912_vm15 = vcmp.lt.s32.totalorder %v5739_v15, 121 }
  0x26   : > { %v5491_v4 = vpop.eup %5490 }
  0x27   : > { %v5493_v5 = vpop.eup %5492  ;;  %v5672_v6 = vmul.f32 0.6931472, %v5491_v4  ;;  %v226_v4 = vld [vmem:[%s6582_s2] sm:$0xff] }
  0x28   : > { %v5495_v7 = vpop.eup %5494  ;;  %v5674_v8 = vmul.f32 0.6931472, %v5493_v5 }
  0x29   : > { %v5497_v10 = vpop.eup %5496  ;;  %231 = vrot.lane.b32.xlu1 %v5672_v6, %s5575_s29  ;;  %v5679_v11 = vmul.f32 0.6931472, %v5495_v7  ;;  %v587_v7 = vrot.slane %v5230_v58, %v5746_v20 }
  0x2a   : > { %227 = vrot.lane.b32.xlu0 %v5674_v8, %s5575_s29  ;;  %v5682_v12 = vmul.f32 0.6931472, %v5497_v10 }
  0x2d   : > { %233 = vrot.lane.b32.xlu1 %v5679_v11, %s5575_s29 }
  0x2e   : > { %229 = vrot.lane.b32.xlu0 %v5682_v12, %s5575_s29  ;;  %s5590_s29 = smov 120  }
  0x31   : > { %183 = vrot.lane.b32.xlu1 %v5682_v12, %s5576_s30 }
  0x32   : > { %181 = vrot.lane.b32.xlu0 %v5674_v8, %s5576_s30 }
  0x35   : > { %187 = vrot.lane.b32.xlu1 %v5679_v11, %s5576_s30 }
  0x36   : > { %185 = vrot.lane.b32.xlu0 %v5672_v6, %s5576_s30 }
  0x39   : > { %566 = vrot.lane.b32.xlu1 %v5682_v12, %s5577_s4 }
  0x3a   : > { %564 = vrot.lane.b32.xlu0 %v5674_v8, %s5577_s4 }
  0x3d   : > { %570 = vrot.lane.b32.xlu1 %v5679_v11, %s5577_s4 }
  0x3e   : > { %568 = vrot.lane.b32.xlu0 %v5672_v6, %s5577_s4  ;;  %s161_s4 = sand.u32 1, %s5564_s13  }
  0x41   : > { %761 = vrot.lane.b32.xlu1 %v5682_v12, %s5578_s5 }
  0x42   : > { %759 = vrot.lane.b32.xlu0 %v5674_v8, %s5578_s5 }
  0x45   : > { %765 = vrot.lane.b32.xlu1 %v5679_v11, %s5578_s5 }
  0x46   : > { %763 = vrot.lane.b32.xlu0 %v5672_v6, %s5578_s5  ;;  %s5221_s5 = sshll.u32 %s161_s4, 5 }
  0x49   : > { %956 = vrot.lane.b32.xlu1 %v5682_v12, %s5579_s6 }
  0x4a   : > { %954 = vrot.lane.b32.xlu0 %v5674_v8, %s5579_s6 }
  0x4d   : > { %960 = vrot.lane.b32.xlu1 %v5679_v11, %s5579_s6 }
  0x4e   : > { %958 = vrot.lane.b32.xlu0 %v5672_v6, %s5579_s6  ;;  %s5332_s6 = sshll.u32 %s5634_s16, 9  ;;  %s5144_s16 = scalar_lea.sflag [#allocation3], %s161_s4 }
  0x51   : > { %1151 = vrot.lane.b32.xlu1 %v5682_v12, %s5580_s7 }
  0x52   : > { %1149 = vrot.lane.b32.xlu0 %v5674_v8, %s5580_s7 }
  0x55   : > { %1155 = vrot.lane.b32.xlu1 %v5679_v11, %s5580_s7 }
  0x56   : > { %1153 = vrot.lane.b32.xlu0 %v5672_v6, %s5580_s7  ;;  %s163_s7 = scalar_lea.vmem [#allocation2], %s5221_s5 }
  0x59   : > { %1346 = vrot.lane.b32.xlu1 %v5682_v12, %s5581_s8 }
  0x5a   : > { %1344 = vrot.lane.b32.xlu0 %v5674_v8, %s5581_s8 }
  0x5d   : > { %1350 = vrot.lane.b32.xlu1 %v5679_v11, %s5581_s8 }
  0x5e   : > { %1348 = vrot.lane.b32.xlu0 %v5672_v6, %s5581_s8  ;;  %s5158_s8 = sshll.u32 %s163_s7, 4  ;;  %s6540_s8 = int_to_ptr.vmem [resolvable:$true] %s5158_s8 }
  0x61   : > { %1541 = vrot.lane.b32.xlu1 %v5682_v12, %s5582_s9 }
  0x62   : > { %1539 = vrot.lane.b32.xlu0 %v5674_v8, %s5582_s9 }
  0x65   : > { %1545 = vrot.lane.b32.xlu1 %v5679_v11, %s5582_s9 }
  0x66   : > { %1543 = vrot.lane.b32.xlu0 %v5672_v6, %s5582_s9  ;;  %s5591_s9 = smov 119  }
  0x69   : > { %1736 = vrot.lane.b32.xlu1 %v5682_v12, %s5583_s10 }
  0x6a   : > { %1734 = vrot.lane.b32.xlu0 %v5674_v8, %s5583_s10 }
  0x6d   : > { %1740 = vrot.lane.b32.xlu1 %v5679_v11, %s5583_s10 }
  0x6e   : > { %1738 = vrot.lane.b32.xlu0 %v5672_v6, %s5583_s10 }
  0x71   : > { %1931 = vrot.lane.b32.xlu1 %v5682_v12, %s5584_s11 }
  0x72   : > { %1929 = vrot.lane.b32.xlu0 %v5674_v8, %s5584_s11 }
  0x75   : > { %1935 = vrot.lane.b32.xlu1 %v5679_v11, %s5584_s11 }
  0x76   : > { %1933 = vrot.lane.b32.xlu0 %v5672_v6, %s5584_s11  ;;  %s6538_s11 = scalar_lea.hbm %s6583_s3, %s5332_s6 }
  0x79   : > { %2126 = vrot.lane.b32.xlu1 %v5682_v12, %s5585_s17 }
  0x7a   : > { %2124 = vrot.lane.b32.xlu0 %v5674_v8, %s5585_s17 }
  0x7d   : > { %2130 = vrot.lane.b32.xlu1 %v5679_v11, %s5585_s17 }
  0x7e   : > { %2128 = vrot.lane.b32.xlu0 %v5672_v6, %s5585_s17  ;;  %s5510_s17 = scalar_lea.vmem %s6540_s8, 512 }
  0x7f   : > { %p5511_p11 = scmp.ne.s32.totalorder %s6540_s8, %s5510_s17 }
  0x81   : > { %2321 = vrot.lane.b32.xlu1 %v5682_v12, %s5586_s19  ;;  %p5512_p12 = pnand %p5511_p11, %p5651_p5 }
  0x82   : > { %2319 = vrot.lane.b32.xlu0 %v5674_v8, %s5586_s19 }
  0x83   : > { %p5513_p13 = pneg %p5512_p12 }
  0x85   : > { %2325 = vrot.lane.b32.xlu1 %v5679_v11, %s5586_s19 }
  0x86   : > { %2323 = vrot.lane.b32.xlu0 %v5672_v6, %s5586_s19 }
  0x89   : > { %2516 = vrot.lane.b32.xlu1 %v5682_v12, %s5587_s20 }
  0x8a   : > { %2514 = vrot.lane.b32.xlu0 %v5674_v8, %s5587_s20 }
  0x8d   : > { %2520 = vrot.lane.b32.xlu1 %v5679_v11, %s5587_s20 }
  0x8e   : > { %2518 = vrot.lane.b32.xlu0 %v5672_v6, %s5587_s20 }
  0x91   : > { %2711 = vrot.lane.b32.xlu1 %v5682_v12, %s5588_s24 }
  0x92   : > { %2709 = vrot.lane.b32.xlu0 %v5674_v8, %s5588_s24 }
  0x95   : > { %2715 = vrot.lane.b32.xlu1 %v5679_v11, %s5588_s24 }
  0x96   : > { %2713 = vrot.lane.b32.xlu0 %v5672_v6, %s5588_s24 }
  0x99   : > { %2906 = vrot.lane.b32.xlu1 %v5682_v12, %s5589_s25 }
  0x9a   : > { %2904 = vrot.lane.b32.xlu0 %v5674_v8, %s5589_s25 }
  0x9b   : > { %v232_v16 = vpop.permute.xlu1 %231 }
  0x9c   : > { %v228_v18 = vpop.permute.xlu0 %227 }
  0x9d   : > { %2910 = vrot.lane.b32.xlu1 %v5679_v11, %s5589_s25 }
  0x9e   : > { %2908 = vrot.lane.b32.xlu0 %v5672_v6, %s5589_s25 }
  0x9f   : > { %v234_v23 = vpop.permute.xlu1 %233 }
  0xa0   : > { %v5759_v25 = vsel %vm235_vm0, %v232_v16, %v234_v23  ;;  %v5763_v26 = vsel %vm235_vm0, %v234_v23, %v228_v18  ;;  %v230_v27 = vpop.permute.xlu0 %229 }
  0xa1   : > { %v240_v30 = vsub.f32 %v5763_v26, %v5674_v8  ;;  %v5771_v31 = vsel %vm235_vm0, %v230_v27, %v232_v16  ;;  %3101 = vrot.lane.b32.xlu1 %v5682_v12, %s5590_s29  ;;  %v5780_v34 = vsel %vm235_vm0, %v228_v18, %v230_v27  ;;  %v243_v36 = vsub.f32 %v5759_v25, %v5679_v11 }
  0xa2   : > { %v242_v35 = vsub.f32 %v5771_v31, %v5672_v6  ;;  %3099 = vrot.lane.b32.xlu0 %v5674_v8, %s5590_s29  ;;  %v241_v38 = vsub.f32 %v5780_v34, %v5682_v12  ;;  %vm3107_vm0 = vcmp.lt.s32.totalorder %v5739_v15, 120 }
  0xa3   : > { %v184_v37 = vpop.permute.xlu1 %183  ;;  %v270_v40 = vmul.f32 %v262_v24, %v243_v36  ;;  %v267_v41 = vmul.f32 %v250_v28, %v240_v30  ;;  %v5234_v28 = vld [vmem:[%s6581_s1 + $0x3] ss:$8 sm:$0xf] }
  0xa4   : > { %v182_v39 = vpop.permute.xlu0 %181  ;;  %v269_v42 = vmul.f32 %v258_v29, %v242_v35  ;;  %v268_v45 = vmul.f32 %v254_v32, %v241_v38  ;;  %v786_v38 = vrot.slane %v5234_v28, %v5753_v22 }
  0xa5   : > { %v5793_v44 = vsel %vm191_vm1, %v182_v39, %v184_v37  ;;  %3105 = vrot.lane.b32.xlu1 %v5679_v11, %s5590_s29  ;;  %348 = vmatprep.subr.mxu1 %v270_v40  ;;  %v5231_v40 = vld [vmem:[%s6582_s2 + $0x10] sm:$0xff] }
  0xa6   : > { %v197_v47 = vsub.f32 %v5793_v44, %v5682_v12  ;;  %3103 = vrot.lane.b32.xlu0 %v5672_v6, %s5590_s29  ;;  %277 = vmatprep.subr.mxu0 %v268_v45 }
  0xa7   : > { %349 = vmatpush1.msra.mxu1 %v269_v42  ;;  %v188_v49 = vpop.permute.xlu1 %187  ;;  %278 = vmatpush1.msra.mxu0 %v267_v41  ;;  %v782_v42 = vrot.slane %v5234_v28, %v5746_v20 }
  0xa8   : > { %v5806_v51 = vsel %vm191_vm1, %v188_v49, %v182_v39  ;;  %5227 = vmatmul.mubr.msk.f32.vlgmr.msra.gmra.mrb[0].mxu1 %vm273_vm2, %v5225_v46  ;;  %v186_v52 = vpop.permute.xlu0 %185  ;;  %v223_v53 = vmul.f32 %v209_v43, %v197_v47  ;;  %5226 = vmatmul.mubr.msk.f32.vlgmr.msra.gmra.mrb[0].mxu0 %vm273_vm2, %v5225_v46  ;;  %v790_v46 = vrot.slane %v5234_v28, %v5744_v19 }
  0xa9   : > { %v196_v55 = vsub.f32 %v5806_v51, %v5674_v8  ;;  %v5815_v56 = vsel %vm191_vm1, %v186_v52, %v188_v49  ;;  %v5819_v57 = vsel %vm191_vm1, %v184_v37, %v186_v52  ;;  %3296 = vrot.lane.b32.xlu1 %v5682_v12, %s5591_s9  ;;  %486 = vmatprep.mubr.f32.mxu0 %v6588_v9  ;;  %vm3302_vm1 = vcmp.lt.s32.totalorder %v5739_v15, 119 }
  0xaa   : > { %v198_v59 = vsub.f32 %v5819_v57, %v5672_v6  ;;  %v199_v60 = vsub.f32 %v5815_v56, %v5679_v11  ;;  %3294 = vrot.lane.b32.xlu0 %v5674_v8, %s5591_s9  ;;  %422 = vmatprep.subr.mxu0 %v223_v53  ;;  %v794_v49 = vrot.slane %v5234_v28, %v5742_v17 }
  0xab   : > { %v222_v61 = vmul.f32 %v205_v48, %v196_v55  ;;  %v567_v62 = vpop.permute.xlu1 %566  ;;  %557 = vmatprep.mubr.f32.mxu1 %v6588_v9 }
  0xac   : > { %v224_v63 = vmul.f32 %v213_v50, %v198_v59  ;;  %v565_v0 = vpop.permute.xlu0 %564  ;;  %v225_v1 = vmul.f32 %v217_v54, %v199_v60  ;;  %v5238_v54 = vld [vmem:[%s6581_s1 + $0x4] ss:$8 sm:$0xf] }
  0xad   : > { %v5836_v3 = vsel %vm572_vm3, %v565_v0, %v567_v62  ;;  %423 = vmatpush1.msra.mxu0 %v222_v61  ;;  %3300 = vrot.lane.b32.xlu1 %v5679_v11, %s5591_s9 }
  0xae   : > { %v578_v5 = vsub.f32 %v5836_v3, %v5682_v12  ;;  %493 = vmatprep.subr.mxu1 %v225_v1  ;;  %3298 = vrot.lane.b32.xlu0 %v5672_v6, %s5591_s9 }
  0xaf   : > { %494 = vmatpush1.msra.mxu1 %v224_v63  ;;  %v571_v10 = vpop.permute.xlu1 %570 }
  0xb0   : > { %v5848_v13 = vsel %vm572_vm3, %v571_v10, %v565_v0  ;;  %5229 = vmatmul.mubr.msk.f32.vlgmr.msra.gmra.mrb[0].mxu1 %vm273_vm2, %v226_v4  ;;  %v569_v16 = vpop.permute.xlu0 %568  ;;  %v605_v18 = vmul.f32 %v591_v2, %v578_v5  ;;  %5228 = vmatmul.mubr.msk.f32.vlgmr.msra.gmra.mrb[0].mxu0 %vm273_vm2, %v226_v4  ;;  %v981_v0 = vrot.slane %v5238_v54, %v5753_v22  ;;  %v5235_v2 = vld [vmem:[%s6582_s2 + $0x18] sm:$0xff] }
  0xb1   : > { %v577_v23 = vsub.f32 %v5848_v13, %v5674_v8  ;;  %v5858_v24 = vsel %vm572_vm3, %v569_v16, %v571_v10  ;;  %v5862_v27 = vsel %vm572_vm3, %v567_v62, %v569_v16  ;;  %677 = vmatprep.mubr.f32.mxu0 %v6588_v9  ;;  %748 = vmatprep.mubr.f32.mxu1 %v6588_v9 }
  0xb2   : > { %v579_v29 = vsub.f32 %v5862_v27, %v5672_v6  ;;  %v580_v30 = vsub.f32 %v5858_v24, %v5679_v11  ;;  %613 = vmatprep.subr.mxu0 %v605_v18  ;;  %v977_v5 = vrot.slane %v5238_v54, %v5746_v20 }
  0xb3   : > { %v604_v32 = vmul.f32 %v587_v7, %v577_v23  ;;  %v762_v33 = vpop.permute.xlu1 %761 }
  0xb4   : > { %v606_v35 = vmul.f32 %v595_v14, %v579_v29  ;;  %v760_v36 = vpop.permute.xlu0 %759  ;;  %v607_v37 = vmul.f32 %v599_v21, %v580_v30  ;;  %v985_v14 = vrot.slane %v5238_v54, %v5744_v19  ;;  %v989_v21 = vrot.slane %v5238_v54, %v5742_v17  ;;  %v5242_v30 = vld [vmem:[%s6581_s1 + $0x5] ss:$8 sm:$0xf] }
  0xb5   : > { %v5877_v39 = vsel %vm767_vm4, %v760_v36, %v762_v33  ;;  %614 = vmatpush1.msra.mxu0 %v604_v32 }
  0xb6   : > { %v773_v41 = vsub.f32 %v5877_v39, %v5682_v12  ;;  %684 = vmatprep.subr.mxu1 %v607_v37 }
  0xb7   : > { %685 = vmatpush1.msra.mxu1 %v606_v35  ;;  %v766_v43 = vpop.permute.xlu1 %765 }
  0xb8   : > { %v5887_v45 = vsel %vm767_vm4, %v766_v43, %v760_v36  ;;  %5233 = vmatmul.mubr.msk.f32.vlgmr.msra.gmra.mrb[0].mxu1 %vm273_vm2, %v5231_v40  ;;  %v764_v47 = vpop.permute.xlu0 %763  ;;  %v800_v48 = vmul.f32 %v786_v38, %v773_v41  ;;  %5232 = vmatmul.mubr.msk.f32.vlgmr.msra.gmra.mrb[0].mxu0 %vm273_vm2, %v5231_v40  ;;  %v1176_v41 = vrot.slane %v5242_v30, %v5753_v22 }
  0xb9   : > { %v772_v50 = vsub.f32 %v5887_v45, %v5674_v8  ;;  %v5897_v52 = vsel %vm767_vm4, %v764_v47, %v766_v43  ;;  %v5901_v53 = vsel %vm767_vm4, %v762_v33, %v764_v47  ;;  %872 = vmatprep.mubr.f32.mxu0 %v6588_v9  ;;  %943 = vmatprep.mubr.f32.mxu1 %v6588_v9  ;;  %v5239_v43 = vld [vmem:[%s6582_s2 + $0x20] sm:$0xff] }
  0xba   : > { %v774_v55 = vsub.f32 %v5901_v53, %v5672_v6  ;;  %v775_v58 = vsub.f32 %v5897_v52, %v5679_v11  ;;  %808 = vmatprep.subr.mxu0 %v800_v48  ;;  %v1172_v47 = vrot.slane %v5242_v30, %v5746_v20 }
  0xbb   : > { %v799_v59 = vmul.f32 %v782_v42, %v772_v50  ;;  %v957_v60 = vpop.permute.xlu1 %956  ;;  %v1180_v50 = vrot.slane %v5242_v30, %v5744_v19 }
  0xbc   : > { %v801_v61 = vmul.f32 %v790_v46, %v774_v55  ;;  %v955_v62 = vpop.permute.xlu0 %954  ;;  %v802_v63 = vmul.f32 %v794_v49, %v775_v58  ;;  %v1184_v58 = vrot.slane %v5242_v30, %v5742_v17 }
  0xbd   : > { %v5916_v1 = vsel %vm962_vm5, %v955_v62, %v957_v60  ;;  %809 = vmatpush1.msra.mxu0 %v799_v59 }
  0xbe   : > { %v968_v4 = vsub.f32 %v5916_v1, %v5682_v12  ;;  %879 = vmatprep.subr.mxu1 %v802_v63 }
  0xbf   : > { %880 = vmatpush1.msra.mxu1 %v801_v61  ;;  %v961_v7 = vpop.permute.xlu1 %960 }
  0xc0   : > { %v5926_v10 = vsel %vm962_vm5, %v961_v7, %v955_v62  ;;  %5237 = vmatmul.mubr.msk.f32.vlgmr.msra.gmra.mrb[0].mxu1 %vm273_vm2, %v5235_v2  ;;  %v959_v16 = vpop.permute.xlu0 %958  ;;  %v995_v18 = vmul.f32 %v981_v0, %v968_v4  ;;  %5236 = vmatmul.mubr.msk.f32.vlgmr.msra.gmra.mrb[0].mxu0 %vm273_vm2, %v5235_v2  ;;  %v5246_v62 = vld [vmem:[%s6581_s1 + $0x6] ss:$8 sm:$0xf] }
  0xc1   : > { %v967_v23 = vsub.f32 %v5926_v10, %v5674_v8  ;;  %v5936_v28 = vsel %vm962_vm5, %v959_v16, %v961_v7  ;;  %v5940_v29 = vsel %vm962_vm5, %v957_v60, %v959_v16  ;;  %1067 = vmatprep.mubr.f32.mxu0 %v6588_v9  ;;  %1138 = vmatprep.mubr.f32.mxu1 %v6588_v9 }
  0xc2   : > { %v969_v32 = vsub.f32 %v5940_v29, %v5672_v6  ;;  %v970_v33 = vsub.f32 %v5936_v28, %v5679_v11  ;;  %1003 = vmatprep.subr.mxu0 %v995_v18  ;;  %v1371_v16 = vrot.slane %v5246_v62, %v5753_v22  ;;  %v1367_v30 = vrot.slane %v5246_v62, %v5746_v20 }
  0xc3   : > { %v994_v35 = vmul.f32 %v977_v5, %v967_v23  ;;  %v1152_v36 = vpop.permute.xlu1 %1151 }
  0xc4   : > { %v996_v37 = vmul.f32 %v985_v14, %v969_v32  ;;  %v1150_v38 = vpop.permute.xlu0 %1149  ;;  %v997_v40 = vmul.f32 %v989_v21, %v970_v33  ;;  %v5243_v21 = vld [vmem:[%s6582_s2 + $0x28] sm:$0xff] }
  0xc5   : > { %v5955_v42 = vsel %vm1157_vm6, %v1150_v38, %v1152_v36  ;;  %1004 = vmatpush1.msra.mxu0 %v994_v35  ;;  %v1375_v35 = vrot.slane %v5246_v62, %v5744_v19 }
  0xc6   : > { %v1163_v46 = vsub.f32 %v5955_v42, %v5682_v12  ;;  %1074 = vmatprep.subr.mxu1 %v997_v40 }
  0xc7   : > { %1075 = vmatpush1.msra.mxu1 %v996_v37  ;;  %v1156_v48 = vpop.permute.xlu1 %1155 }
  0xc8   : > { %v5965_v49 = vsel %vm1157_vm6, %v1156_v48, %v1150_v38  ;;  %5241 = vmatmul.mubr.msk.f32.vlgmr.msra.gmra.mrb[0].mxu1 %vm273_vm2, %v5239_v43  ;;  %v1154_v54 = vpop.permute.xlu0 %1153  ;;  %v1190_v55 = vmul.f32 %v1176_v41, %v1163_v46  ;;  %5240 = vmatmul.mubr.msk.f32.vlgmr.msra.gmra.mrb[0].mxu0 %vm273_vm2, %v5239_v43  ;;  %v1379_v38 = vrot.slane %v5246_v62, %v5742_v17  ;;  %v5250_v46 = vld [vmem:[%s6581_s1 + $0x7] ss:$8 sm:$0xf] }
  0xc9   : > { %v1162_v59 = vsub.f32 %v5965_v49, %v5674_v8  ;;  %v5975_v60 = vsel %vm1157_vm6, %v1154_v54, %v1156_v48  ;;  %v5979_v61 = vsel %vm1157_vm6, %v1152_v36, %v1154_v54  ;;  %1262 = vmatprep.mubr.f32.mxu0 %v6588_v9  ;;  %1333 = vmatprep.mubr.f32.mxu1 %v6588_v9 }
  0xca   : > { %v1164_v63 = vsub.f32 %v5979_v61, %v5672_v6  ;;  %v1165_v0 = vsub.f32 %v5975_v60, %v5679_v11  ;;  %1198 = vmatprep.subr.mxu0 %v1190_v55  ;;  %v1566_v62 = vrot.slane %v5250_v46, %v5753_v22 }
  0xcb   : > { %v1189_v2 = vmul.f32 %v1172_v47, %v1162_v59  ;;  %v1347_v4 = vpop.permute.xlu1 %1346 }
  0xcc   : > { %v1191_v5 = vmul.f32 %v1180_v50, %v1164_v63  ;;  %v1345_v7 = vpop.permute.xlu0 %1344  ;;  %v1192_v14 = vmul.f32 %v1184_v58, %v1165_v0  ;;  %v5247_v0 = vld [vmem:[%s6582_s2 + $0x30] sm:$0xff] }
  0xcd   : > { %v5994_v18 = vsel %vm1352_vm7, %v1345_v7, %v1347_v4  ;;  %1199 = vmatpush1.msra.mxu0 %v1189_v2 }
  0xce   : > { %v1358_v23 = vsub.f32 %v5994_v18, %v5682_v12  ;;  %1269 = vmatprep.subr.mxu1 %v1192_v14  ;;  %v1570_v14 = vrot.slane %v5250_v46, %v5744_v19 }
  0xcf   : > { %1270 = vmatpush1.msra.mxu1 %v1191_v5  ;;  %v1351_v32 = vpop.permute.xlu1 %1350 }
  0xd0   : > { %v6004_v33 = vsel %vm1352_vm7, %v1351_v32, %v1345_v7  ;;  %5245 = vmatmul.mubr.msk.f32.vlgmr.msra.gmra.mrb[0].mxu1 %vm273_vm2, %v5243_v21  ;;  %v1349_v36 = vpop.permute.xlu0 %1348  ;;  %v1385_v37 = vmul.f32 %v1371_v16, %v1358_v23  ;;  %5244 = vmatmul.mubr.msk.f32.vlgmr.msra.gmra.mrb[0].mxu0 %vm273_vm2, %v5243_v21  ;;  %v1574_v23 = vrot.slane %v5250_v46, %v5742_v17 }
  0xd1   : > { %v1357_v40 = vsub.f32 %v6004_v33, %v5674_v8  ;;  %v6014_v41 = vsel %vm1352_vm7, %v1349_v36, %v1351_v32  ;;  %v6018_v43 = vsel %vm1352_vm7, %v1347_v4, %v1349_v36  ;;  %1457 = vmatprep.mubr.f32.mxu0 %v6588_v9  ;;  %1528 = vmatprep.mubr.f32.mxu1 %v6588_v9  ;;  %v5254_v36 = vld [vmem:[%s6581_s1 + $0x20] ss:$8 sm:$0xf] }
  0xd2   : > { %v1359_v47 = vsub.f32 %v6018_v43, %v5672_v6  ;;  %v1360_v48 = vsub.f32 %v6014_v41, %v5679_v11  ;;  %1393 = vmatprep.subr.mxu0 %v1385_v37  ;;  %v1562_v4 = vrot.slane %v5250_v46, %v5746_v20 }
  0xd3   : > { %v1384_v50 = vmul.f32 %v1367_v30, %v1357_v40  ;;  %v1542_v54 = vpop.permute.xlu1 %1541 }
  0xd4   : > { %v1386_v55 = vmul.f32 %v1375_v35, %v1359_v47  ;;  %v1540_v58 = vpop.permute.xlu0 %1539  ;;  %v1387_v59 = vmul.f32 %v1379_v38, %v1360_v48 }
  0xd5   : > { %v6033_v63 = vsel %vm1547_vm8, %v1540_v58, %v1542_v54  ;;  %1394 = vmatpush1.msra.mxu0 %v1384_v50 }
  0xd6   : > { %v1553_v2 = vsub.f32 %v6033_v63, %v5682_v12  ;;  %1464 = vmatprep.subr.mxu1 %v1387_v59 }
  0xd7   : > { %1465 = vmatpush1.msra.mxu1 %v1386_v55  ;;  %v1546_v5 = vpop.permute.xlu1 %1545 }
  0xd8   : > { %v6043_v7 = vsel %vm1547_vm8, %v1546_v5, %v1540_v58  ;;  %5249 = vmatmul.mubr.msk.f32.vlgmr.msra.gmra.mrb[0].mxu1 %vm273_vm2, %v5247_v0  ;;  %v1544_v16 = vpop.permute.xlu0 %1543  ;;  %v1580_v21 = vmul.f32 %v1566_v62, %v1553_v2  ;;  %5248 = vmatmul.mubr.msk.f32.vlgmr.msra.gmra.mrb[0].mxu0 %vm273_vm2, %v5247_v0  ;;  %v5251_v58 = vld [vmem:[%s6582_s2 + $0x38] sm:$0xff]  ;;  %v1757_v62 = vrot.slane %v5254_v36, %v5746_v20 }
  0xd9   : > { %v1552_v30 = vsub.f32 %v6043_v7, %v5674_v8  ;;  %v6053_v32 = vsel %vm1547_vm8, %v1544_v16, %v1546_v5  ;;  %v6057_v35 = vsel %vm1547_vm8, %v1542_v54, %v1544_v16  ;;  %1652 = vmatprep.mubr.f32.mxu0 %v6588_v9  ;;  %1723 = vmatprep.mubr.f32.mxu1 %v6588_v9 }
  0xda   : > { %v1554_v37 = vsub.f32 %v6057_v35, %v5672_v6  ;;  %v1555_v38 = vsub.f32 %v6053_v32, %v5679_v11  ;;  %1588 = vmatprep.subr.mxu0 %v1580_v21  ;;  %v1761_v54 = vrot.slane %v5254_v36, %v5753_v22  ;;  %v1769_v16 = vrot.slane %v5254_v36, %v5742_v17 }
  0xdb   : > { %v1579_v40 = vmul.f32 %v1562_v4, %v1552_v30  ;;  %v1737_v46 = vpop.permute.xlu1 %1736  ;;  %v1765_v4 = vrot.slane %v5254_v36, %v5744_v19 }
  0xdc   : > { %v1581_v47 = vmul.f32 %v1570_v14, %v1554_v37  ;;  %v1735_v48 = vpop.permute.xlu0 %1734  ;;  %v1582_v50 = vmul.f32 %v1574_v23, %v1555_v38  ;;  %v5258_v37 = vld [vmem:[%s6581_s1 + $0x21] ss:$8 sm:$0xf] }
  0xdd   : > { %v6072_v55 = vsel %vm1742_vm9, %v1735_v48, %v1737_v46  ;;  %1589 = vmatpush1.msra.mxu0 %v1579_v40 }
  0xde   : > { %6592 = vst [vmem:[#allocation5_spill] sm:$0xff] %v6072_v55  ;;  %v1748_v59 = vsub.f32 %v6072_v55, %v5682_v12  ;;  %1659 = vmatprep.subr.mxu1 %v1582_v50 }
  0xdf   : > { %1660 = vmatpush1.msra.mxu1 %v1581_v47  ;;  %v1741_v0 = vpop.permute.xlu1 %1740 }
  0xe0   : > { %v6082_v2 = vsel %vm1742_vm9, %v1741_v0, %v1735_v48  ;;  %5253 = vmatmul.mubr.msk.f32.vlgmr.msra.gmra.mrb[0].mxu1 %vm273_vm2, %v5251_v58  ;;  %v1739_v5 = vpop.permute.xlu0 %1738  ;;  %v1775_v14 = vmul.f32 %v1761_v54, %v1748_v59  ;;  %5252 = vmatmul.mubr.msk.f32.vlgmr.msra.gmra.mrb[0].mxu0 %vm273_vm2, %v5251_v58  ;;  %v1956_v54 = vrot.slane %v5258_v37, %v5753_v22  ;;  %v5255_v59 = vld [vmem:[%s6582_s2 + $0x40] sm:$0xff] }
  0xe1   : > { %6593 = vst [vmem:[#allocation6_spill] sm:$0xff] %v6082_v2  ;;  %v1747_v21 = vsub.f32 %v6082_v2, %v5674_v8  ;;  %v6092_v23 = vsel %vm1742_vm9, %v1739_v5, %v1741_v0  ;;  %v6096_v30 = vsel %vm1742_vm9, %v1737_v46, %v1739_v5  ;;  %1847 = vmatprep.mubr.f32.mxu0 %v6588_v9 }
  0xe2   : > { %6594 = vst [vmem:[#allocation7_spill] sm:$0xff] %v6092_v23  ;;  %6595 = vst [vmem:[#allocation8_spill] sm:$0xff] %v6096_v30  ;;  %v1749_v36 = vsub.f32 %v6096_v30, %v5672_v6  ;;  %v1750_v38 = vsub.f32 %v6092_v23, %v5679_v11  ;;  %1783 = vmatprep.subr.mxu0 %v1775_v14  ;;  %1918 = vmatprep.mubr.f32.mxu1 %v6588_v9 }
  0xe3   : > { %v1774_v40 = vmul.f32 %v1757_v62, %v1747_v21  ;;  %v1932_v47 = vpop.permute.xlu1 %1931  ;;  %v1952_v0 = vrot.slane %v5258_v37, %v5746_v20  ;;  %v1960_v14 = vrot.slane %v5258_v37, %v5744_v19 }
  0xe4   : > { %v1776_v46 = vmul.f32 %v1765_v4, %v1749_v36  ;;  %v1930_v48 = vpop.permute.xlu0 %1929  ;;  %v1777_v50 = vmul.f32 %v1769_v16, %v1750_v38  ;;  %v1964_v36 = vrot.slane %v5258_v37, %v5742_v17 }
  0xe5   : > { %v1940_v58 = vsel %vm1937_vm10, %v1930_v48, %v1932_v47  ;;  %1784 = vmatpush1.msra.mxu0 %v1774_v40 }
  0xe6   : > { %v1943_v62 = vsub.f32 %v1940_v58, %v5682_v12  ;;  %1854 = vmatprep.subr.mxu1 %v1777_v50 }
  0xe7   : > { %1855 = vmatpush1.msra.mxu1 %v1776_v46  ;;  %v1936_v5 = vpop.permute.xlu1 %1935 }
  0xe8   : > { %v1941_v4 = vsel %vm1937_vm10, %v1936_v5, %v1930_v48  ;;  %5257 = vmatmul.mubr.msk.f32.vlgmr.msra.gmra.mrb[0].mxu1 %vm273_vm2, %v5255_v59  ;;  %v1934_v16 = vpop.permute.xlu0 %1933  ;;  %v1970_v21 = vmul.f32 %v1956_v54, %v1943_v62  ;;  %5256 = vmatmul.mubr.msk.f32.vlgmr.msra.gmra.mrb[0].mxu0 %vm273_vm2, %v5255_v59  ;;  %v5262_v48 = vld [vmem:[%s6581_s1 + $0x22] ss:$8 sm:$0xf] }
  0xe9   : > { %v1942_v38 = vsub.f32 %v1941_v4, %v5674_v8  ;;  %v1938_v40 = vsel %vm1937_vm10, %v1934_v16, %v1936_v5  ;;  %v1939_v46 = vsel %vm1937_vm10, %v1932_v47, %v1934_v16  ;;  %2113 = vmatprep.mubr.f32.mxu1 %v6588_v9  ;;  %2042 = vmatprep.mubr.f32.mxu0 %v6588_v9  ;;  %v5259_v16 = vld [vmem:[%s6582_s2 + $0x48] sm:$0xff] }
  0xea   : > { %v1944_v50 = vsub.f32 %v1939_v46, %v5672_v6  ;;  %v1945_v37 = vsub.f32 %v1938_v40, %v5679_v11  ;;  %1978 = vmatprep.subr.mxu0 %v1970_v21  ;;  %v2151_v5 = vrot.slane %v5262_v48, %v5753_v22 }
  0xeb   : > { %v1969_v54 = vmul.f32 %v1952_v0, %v1942_v38  ;;  %v2127_v58 = vpop.permute.xlu1 %2126  ;;  %v2147_v0 = vrot.slane %v5262_v48, %v5746_v20 }
  0xec   : > { %v1971_v59 = vmul.f32 %v1960_v14, %v1944_v50  ;;  %v2125_v62 = vpop.permute.xlu0 %2124  ;;  %v1972_v47 = vmul.f32 %v1964_v36, %v1945_v37  ;;  %v2155_v36 = vrot.slane %v5262_v48, %v5744_v19  ;;  %v2159_v50 = vrot.slane %v5262_v48, %v5742_v17 }
  0xed   : > { %v2135_v4 = vsel %vm2132_vm11, %v2125_v62, %v2127_v58  ;;  %1979 = vmatpush1.msra.mxu0 %v1969_v54 }
  0xee   : > { %v2138_v21 = vsub.f32 %v2135_v4, %v5682_v12  ;;  %2049 = vmatprep.subr.mxu1 %v1972_v47 }
  0xef   : > { %2050 = vmatpush1.msra.mxu1 %v1971_v59  ;;  %v2131_v38 = vpop.permute.xlu1 %2130 }
  0xf0   : > { %v2136_v14 = vsel %vm2132_vm11, %v2131_v38, %v2125_v62  ;;  %5261 = vmatmul.mubr.msk.f32.vlgmr.msra.gmra.mrb[0].mxu1 %vm273_vm2, %v5259_v16  ;;  %v2129_v40 = vpop.permute.xlu0 %2128  ;;  %v2165_v46 = vmul.f32 %v2151_v5, %v2138_v21  ;;  %5260 = vmatmul.mubr.msk.f32.vlgmr.msra.gmra.mrb[0].mxu0 %vm273_vm2, %v5259_v16  ;;  %v5266_v62 = vld [vmem:[%s6581_s1 + $0x23] ss:$8 sm:$0xf] }
  0xf1   : > { %v2137_v37 = vsub.f32 %v2136_v14, %v5674_v8  ;;  %v2133_v54 = vsel %vm2132_vm11, %v2129_v40, %v2131_v38  ;;  %v2134_v59 = vsel %vm2132_vm11, %v2127_v58, %v2129_v40  ;;  %2308 = vmatprep.mubr.f32.mxu1 %v6588_v9  ;;  %2237 = vmatprep.mubr.f32.mxu0 %v6588_v9  ;;  %v5263_v40 = vld [vmem:[%s6582_s2 + $0x50] sm:$0xff] }
  0xf2   : > { %v2139_v47 = vsub.f32 %v2134_v59, %v5672_v6  ;;  %v2140_v48 = vsub.f32 %v2133_v54, %v5679_v11  ;;  %2173 = vmatprep.subr.mxu0 %v2165_v46  ;;  %v2346_v38 = vrot.slane %v5266_v62, %v5753_v22 }
  0xf3   : > { %v2164_v5 = vmul.f32 %v2147_v0, %v2137_v37  ;;  %v2322_v4 = vpop.permute.xlu1 %2321  ;;  %v2342_v0 = vrot.slane %v5266_v62, %v5746_v20 }
  0xf4   : > { %v2166_v16 = vmul.f32 %v2155_v36, %v2139_v47  ;;  %v2320_v21 = vpop.permute.xlu0 %2319  ;;  %v2167_v58 = vmul.f32 %v2159_v50, %v2140_v48  ;;  %v2350_v50 = vrot.slane %v5266_v62, %v5744_v19  ;;  %v2354_v47 = vrot.slane %v5266_v62, %v5742_v17 }
  0xf5   : > { %v2330_v14 = vsel %vm2327_vm12, %v2320_v21, %v2322_v4  ;;  %2174 = vmatpush1.msra.mxu0 %v2164_v5 }
  0xf6   : > { %v2333_v46 = vsub.f32 %v2330_v14, %v5682_v12  ;;  %2244 = vmatprep.subr.mxu1 %v2167_v58 }
  0xf7   : > { %2245 = vmatpush1.msra.mxu1 %v2166_v16  ;;  %v2326_v37 = vpop.permute.xlu1 %2325 }
  0xf8   : > { %v2331_v36 = vsel %vm2327_vm12, %v2326_v37, %v2320_v21  ;;  %5265 = vmatmul.mubr.msk.f32.vlgmr.msra.gmra.mrb[0].mxu1 %vm273_vm2, %v5263_v40  ;;  %v2324_v54 = vpop.permute.xlu0 %2323  ;;  %v2360_v59 = vmul.f32 %v2346_v38, %v2333_v46  ;;  %5264 = vmatmul.mubr.msk.f32.vlgmr.msra.gmra.mrb[0].mxu0 %vm273_vm2, %v5263_v40  ;;  %v5270_v21 = vld [vmem:[%s6581_s1 + $0x24] ss:$8 sm:$0xf] }
  0xf9   : > { %v2332_v48 = vsub.f32 %v2331_v36, %v5674_v8  ;;  %v2328_v5 = vsel %vm2327_vm12, %v2324_v54, %v2326_v37  ;;  %v2329_v16 = vsel %vm2327_vm12, %v2322_v4, %v2324_v54  ;;  %2503 = vmatprep.mubr.f32.mxu1 %v6588_v9  ;;  %2432 = vmatprep.mubr.f32.mxu0 %v6588_v9  ;;  %v5267_v54 = vld [vmem:[%s6582_s2 + $0x58] sm:$0xff] }
  0xfa   : > { %v2334_v58 = vsub.f32 %v2329_v16, %v5672_v6  ;;  %v2335_v62 = vsub.f32 %v2328_v5, %v5679_v11  ;;  %2368 = vmatprep.subr.mxu0 %v2360_v59  ;;  %v2541_v37 = vrot.slane %v5270_v21, %v5753_v22 }
  0xfb   : > { %v2359_v38 = vmul.f32 %v2342_v0, %v2332_v48  ;;  %v2517_v14 = vpop.permute.xlu1 %2516  ;;  %v2537_v0 = vrot.slane %v5270_v21, %v5746_v20 }
  0xfc   : > { %v2361_v40 = vmul.f32 %v2350_v50, %v2334_v58  ;;  %v2515_v46 = vpop.permute.xlu0 %2514  ;;  %v2362_v4 = vmul.f32 %v2354_v47, %v2335_v62  ;;  %v2545_v47 = vrot.slane %v5270_v21, %v5744_v19  ;;  %v2549_v58 = vrot.slane %v5270_v21, %v5742_v17 }
  0xfd   : > { %v2525_v36 = vsel %vm2522_vm13, %v2515_v46, %v2517_v14  ;;  %2369 = vmatpush1.msra.mxu0 %v2359_v38 }
  0xfe   : > { %v2528_v59 = vsub.f32 %v2525_v36, %v5682_v12  ;;  %2439 = vmatprep.subr.mxu1 %v2362_v4 }
  0xff   : > { %2440 = vmatpush1.msra.mxu1 %v2361_v40  ;;  %v2521_v48 = vpop.permute.xlu1 %2520 }
 0x100   : > { %v2526_v50 = vsel %vm2522_vm13, %v2521_v48, %v2515_v46  ;;  %5269 = vmatmul.mubr.msk.f32.vlgmr.msra.gmra.mrb[0].mxu1 %vm273_vm2, %v5267_v54  ;;  %v2519_v5 = vpop.permute.xlu0 %2518  ;;  %v2555_v16 = vmul.f32 %v2541_v37, %v2528_v59  ;;  %5268 = vmatmul.mubr.msk.f32.vlgmr.msra.gmra.mrb[0].mxu0 %vm273_vm2, %v5267_v54  ;;  %v5274_v54 = vld [vmem:[%s6581_s1 + $0x25] ss:$8 sm:$0xf] }
 0x101   : > { %v2527_v62 = vsub.f32 %v2526_v50, %v5674_v8  ;;  %v2523_v38 = vsel %vm2522_vm13, %v2519_v5, %v2521_v48  ;;  %v2524_v40 = vsel %vm2522_vm13, %v2517_v14, %v2519_v5  ;;  %2698 = vmatprep.mubr.f32.mxu1 %v6588_v9  ;;  %2627 = vmatprep.mubr.f32.mxu0 %v6588_v9  ;;  %v5271_v50 = vld [vmem:[%s6582_s2 + $0x60] sm:$0xff] }
 0x102   : > { %v2529_v46 = vsub.f32 %v2524_v40, %v5672_v6  ;;  %v2530_v4 = vsub.f32 %v2523_v38, %v5679_v11  ;;  %2563 = vmatprep.subr.mxu0 %v2555_v16  ;;  %v2732_v5 = vrot.slane %v5274_v54, %v5746_v20  ;;  %v2736_v40 = vrot.slane %v5274_v54, %v5753_v22 }
 0x103   : > { %v2554_v21 = vmul.f32 %v2537_v0, %v2527_v62  ;;  %v2712_v37 = vpop.permute.xlu1 %2711  ;;  %v2740_v62 = vrot.slane %v5274_v54, %v5744_v19 }
 0x104   : > { %v2556_v36 = vmul.f32 %v2545_v47, %v2529_v46  ;;  %v2710_v59 = vpop.permute.xlu0 %2709  ;;  %v2557_v14 = vmul.f32 %v2549_v58, %v2530_v4  ;;  %v2744_v47 = vrot.slane %v5274_v54, %v5742_v17 }
 0x105   : > { %v2720_v48 = vsel %vm2717_vm14, %v2710_v59, %v2712_v37  ;;  %2564 = vmatpush1.msra.mxu0 %v2554_v21 }
 0x106   : > { %2634 = vmatprep.subr.mxu1 %v2557_v14  ;;  %v2722_v16 = vsub.f32 %v2720_v48, %v5674_v8 }
 0x107   : > { %2635 = vmatpush1.msra.mxu1 %v2556_v36  ;;  %v2716_v0 = vpop.permute.xlu1 %2715 }
 0x108   : > { %v2721_v58 = vsel %vm2717_vm14, %v2716_v0, %v2710_v59  ;;  %5273 = vmatmul.mubr.msk.f32.vlgmr.msra.gmra.mrb[0].mxu1 %vm273_vm2, %v5271_v50  ;;  %v2714_v38 = vpop.permute.xlu0 %2713  ;;  %5272 = vmatmul.mubr.msk.f32.vlgmr.msra.gmra.mrb[0].mxu0 %vm273_vm2, %v5271_v50  ;;  %v5278_v50 = vld [vmem:[%s6581_s1 + $0x26] ss:$8 sm:$0xf] }
 0x109   : > { %v2725_v46 = vsub.f32 %v2721_v58, %v5679_v11  ;;  %v2718_v4 = vsel %vm2717_vm14, %v2714_v38, %v2716_v0  ;;  %v2719_v21 = vsel %vm2717_vm14, %v2712_v37, %v2714_v38  ;;  %2893 = vmatprep.mubr.f32.mxu1 %v6588_v9  ;;  %2822 = vmatprep.mubr.f32.mxu0 %v6588_v9 }
 0x10a   : > { %v2723_v36 = vsub.f32 %v2719_v21, %v5682_v12  ;;  %v2724_v59 = vsub.f32 %v2718_v4, %v5672_v6  ;;  %v2749_v37 = vmul.f32 %v2732_v5, %v2722_v16  ;;  %v5275_v4 = vld [vmem:[%s6582_s2 + $0x68] sm:$0xff]  ;;  %v2935_v16 = vrot.slane %v5278_v50, %v5744_v19 }
 0x10b   : > { %v2907_v54 = vpop.permute.xlu1 %2906  ;;  %v2752_v14 = vmul.f32 %v2744_v47, %v2725_v46  ;;  %v2927_v47 = vrot.slane %v5278_v50, %v5746_v20  ;;  %v2939_v46 = vrot.slane %v5278_v50, %v5742_v17 }
 0x10c   : > { %v2751_v48 = vmul.f32 %v2740_v62, %v2724_v59  ;;  %v2905_v0 = vpop.permute.xlu0 %2904  ;;  %v2750_v58 = vmul.f32 %v2736_v40, %v2723_v36  ;;  %v2931_v36 = vrot.slane %v5278_v50, %v5753_v22 }
 0x10d   : > { %v2915_v38 = vsel %vm2912_vm15, %v2905_v0, %v2907_v54  ;;  %2829 = vmatprep.subr.mxu1 %v2752_v14 }
 0x10e   : > { %2758 = vmatprep.subr.mxu0 %v2750_v58  ;;  %2830 = vmatpush1.msra.mxu1 %v2751_v48  ;;  %v2917_v21 = vsub.f32 %v2915_v38, %v5674_v8 }
 0x10f   : > { %2759 = vmatpush1.msra.mxu0 %v2749_v37  ;;  %v2911_v62 = vpop.permute.xlu1 %2910 }
 0x110   : > { %v2916_v5 = vsel %vm2912_vm15, %v2911_v62, %v2905_v0  ;;  %5277 = vmatmul.mubr.msk.f32.vlgmr.msra.gmra.mrb[0].mxu1 %vm273_vm2, %v5275_v4  ;;  %v2909_v40 = vpop.permute.xlu0 %2908  ;;  %5276 = vmatmul.mubr.msk.f32.vlgmr.msra.gmra.mrb[0].mxu0 %vm273_vm2, %v5275_v4  ;;  %v5282_v4 = vld [vmem:[%s6581_s1 + $0x27] ss:$8 sm:$0xf] }
 0x111   : > { %v2920_v59 = vsub.f32 %v2916_v5, %v5679_v11  ;;  %v2913_v14 = vsel %vm2912_vm15, %v2909_v40, %v2911_v62  ;;  %v2914_v48 = vsel %vm2912_vm15, %v2907_v54, %v2909_v40  ;;  %3088 = vmatprep.mubr.f32.mxu1 %v6588_v9  ;;  %3017 = vmatprep.mubr.f32.mxu0 %v6588_v9 }
 0x112   : > { %v2918_v0 = vsub.f32 %v2914_v48, %v5682_v12  ;;  %v2919_v58 = vsub.f32 %v2913_v14, %v5672_v6  ;;  %v2944_v54 = vmul.f32 %v2927_v47, %v2917_v21  ;;  %v5279_v14 = vld [vmem:[%s6582_s2 + $0x70] sm:$0xff]  ;;  %v3130_v21 = vrot.slane %v5282_v4, %v5744_v19 }
 0x113   : > { %v3102_v50 = vpop.permute.xlu1 %3101  ;;  %v2947_v37 = vmul.f32 %v2939_v46, %v2920_v59  ;;  %v3122_v46 = vrot.slane %v5282_v4, %v5746_v20  ;;  %v3134_v59 = vrot.slane %v5282_v4, %v5742_v17 }
 0x114   : > { %v2946_v38 = vmul.f32 %v2935_v16, %v2919_v58  ;;  %v3100_v62 = vpop.permute.xlu0 %3099  ;;  %v2945_v5 = vmul.f32 %v2931_v36, %v2918_v0  ;;  %v3126_v0 = vrot.slane %v5282_v4, %v5753_v22  ;;  %v6296_v4 = vld [vmem:[%s6581_s1 + $0x42] ss:$8 sm:$0xf] }
 0x115   : > { %v3110_v40 = vsel %vm3107_vm0, %v3100_v62, %v3102_v50  ;;  %3024 = vmatprep.subr.mxu1 %v2947_v37 }
 0x116   : > { %2953 = vmatprep.subr.mxu0 %v2945_v5  ;;  %3025 = vmatpush1.msra.mxu1 %v2946_v38  ;;  %v3112_v48 = vsub.f32 %v3110_v40, %v5674_v8  ;;  %v5290_v40 = vld [vmem:[%s6581_s1 + $0x41] ss:$8 sm:$0xf] }
 0x117   : > { %2954 = vmatpush1.msra.mxu0 %v2944_v54  ;;  %v3106_v16 = vpop.permute.xlu1 %3105  ;;  %v3503_v2 = vrot.slane %v5290_v40, %v5753_v22  ;;  %v3511_v15 = vrot.slane %v5290_v40, %v5742_v17 }
 0x118   : > { %v3111_v47 = vsel %vm3107_vm0, %v3106_v16, %v3100_v62  ;;  %5281 = vmatmul.mubr.msk.f32.vlgmr.msra.gmra.mrb[0].mxu1 %vm273_vm2, %v5279_v14  ;;  %v3104_v36 = vpop.permute.xlu0 %3103  ;;  %5280 = vmatmul.mubr.msk.f32.vlgmr.msra.gmra.mrb[0].mxu0 %vm273_vm2, %v5279_v14 }
 0x119   : > { %v3115_v58 = vsub.f32 %v3111_v47, %v5679_v11  ;;  %v3108_v37 = vsel %vm3107_vm0, %v3104_v36, %v3106_v16  ;;  %v3109_v38 = vsel %vm3107_vm0, %v3102_v50, %v3104_v36  ;;  %3283 = vmatprep.mubr.f32.mxu1 %v6588_v9  ;;  %3212 = vmatprep.mubr.f32.mxu0 %v6588_v9  ;;  %v5286_v36 = vld [vmem:[%s6581_s1 + $0x40] ss:$8 sm:$0xf] }
 0x11a   : > { %v3113_v62 = vsub.f32 %v3109_v38, %v5682_v12  ;;  %v3114_v5 = vsub.f32 %v3108_v37, %v5672_v6  ;;  %v3139_v47 = vmul.f32 %v3122_v46, %v3112_v48  ;;  %v3499_v46 = vrot.slane %v5290_v40, %v5746_v20 }
 0x11b   : > { %v3142_v54 = vmul.f32 %v3134_v59, %v3115_v58  ;;  %v3297_v50 = vpop.permute.xlu1 %3296  ;;  %v5283_v59 = vld [vmem:[%s6582_s2 + $0x78] sm:$0xff]  ;;  %v3507_v48 = vrot.slane %v5290_v40, %v5744_v19  ;;  %v3317_v58 = vrot.slane %v5286_v36, %v5746_v20 }
 0x11c   : > { %v3141_v14 = vmul.f32 %v3130_v21, %v3114_v5  ;;  %v3140_v16 = vmul.f32 %v3126_v0, %v3113_v62  ;;  %v3295_v37 = vpop.permute.xlu0 %3294  ;;  %v3685_v0 = vrot.slane %v6296_v4, %v5753_v22  ;;  %v3329_v62 = vrot.slane %v5286_v36, %v5742_v17 }
 0x11d   : > { %3219 = vmatprep.subr.mxu1 %v3142_v54  ;;  %v3305_v21 = vsel %vm3302_vm1, %v3295_v37, %v3297_v50  ;;  %v3325_v54 = vrot.slane %v5286_v36, %v5744_v19 }
 0x11e   : > { %3148 = vmatprep.subr.mxu0 %v3140_v16  ;;  %3220 = vmatpush1.msra.mxu1 %v3141_v14  ;;  %v3321_v16 = vrot.slane %v5286_v36, %v5753_v22 }
 0x11f   : > { %3149 = vmatpush1.msra.mxu0 %v3139_v47  ;;  %v3301_v38 = vpop.permute.xlu1 %3300  ;;  %v3307_v47 = vsub.f32 %v3305_v21, %v5674_v8  ;;  %v3489_v21 = vsub.f32 %v5793_v44, %v5674_v8  ;;  %v3674_v44 = vsub.f32 %v5763_v26, %v5679_v11 }
 0x120   : > { %5285 = vmatmul.mubr.msk.f32.vlgmr.msra.gmra.mrb[0].mxu1 %vm273_vm2, %v5283_v59  ;;  %v3306_v5 = vsel %vm3302_vm1, %v3301_v38, %v3295_v37  ;;  %5284 = vmatmul.mubr.msk.f32.vlgmr.msra.gmra.mrb[0].mxu0 %vm273_vm2, %v5283_v59  ;;  %v3299_v14 = vpop.permute.xlu0 %3298  ;;  %v3490_v37 = vsub.f32 %v5819_v57, %v5682_v12  ;;  %v3491_v57 = vsub.f32 %v5815_v56, %v5672_v6 }
 0x121   : > { %3478 = vmatprep.mubr.f32.mxu1 %v6588_v9  ;;  %v3310_v55 = vsub.f32 %v3306_v5, %v5679_v11  ;;  %v3303_v23 = vsel %vm3302_vm1, %v3299_v14, %v3301_v38  ;;  %v3304_v30 = vsel %vm3302_vm1, %v3297_v50, %v3299_v14  ;;  %3407 = vmatprep.mubr.f32.mxu0 %v6588_v9 }
 0x122   : > { %v3308_v59 = vsub.f32 %v3304_v30, %v5682_v12  ;;  %v3309_v36 = vsub.f32 %v3303_v23, %v5672_v6  ;;  %v3492_v38 = vsub.f32 %v5806_v51, %v5679_v11  ;;  %v3672_v50 = vsub.f32 %v5771_v31, %v5682_v12  ;;  %v5287_v23 = vld [vmem:[%s6582_s2 + $0x80] sm:$0xff] }
 0x123   : > { %v3337_v5 = vmul.f32 %v3329_v62, %v3310_v55  ;;  %v3334_v9 = vmul.f32 %v3317_v58, %v3307_v47  ;;  %v3693_v51 = vrot.slane %v6296_v4, %v5742_v17  ;;  %v3517_v31 = vmul.f32 %v3503_v2, %v3490_v37  ;;  %v5298_v2 = vld [vmem:[%s6581_s1 + $0x43] ss:$8 sm:$0xf] }
 0x124   : > { %v3336_v30 = vmul.f32 %v3325_v54, %v3309_v36  ;;  %v3335_v14 = vmul.f32 %v3321_v16, %v3308_v59  ;;  %v3516_v55 = vmul.f32 %v3499_v46, %v3489_v21  ;;  %v3519_v56 = vmul.f32 %v3511_v15, %v3492_v38  ;;  %v5291_v16 = vld [vmem:[%s6582_s2 + $0x88] sm:$0xff] }
 0x125   : > { %3414 = vmatprep.subr.mxu1 %v3337_v5  ;;  %v3518_v40 = vmul.f32 %v3507_v48, %v3491_v57  ;;  %v3699_v62 = vmul.f32 %v3685_v0, %v3672_v50  ;;  %v3701_v26 = vmul.f32 %v3693_v51, %v3674_v44  ;;  %v3689_v58 = vrot.slane %v6296_v4, %v5744_v19  ;;  %v5302_v21 = vld [vmem:[%s6581_s1 + $0x44] ss:$8 sm:$0xf]  ;;  %v5306_v51 = vld [vmem:[%s6581_s1 + $0x45] ss:$8 sm:$0xf] }
 0x126   : > { %3343 = vmatprep.subr.mxu0 %v3335_v14  ;;  %3415 = vmatpush1.msra.mxu1 %v3336_v30  ;;  %v3673_v54 = vsub.f32 %v5759_v25, %v5672_v6  ;;  %v3671_v0 = vsub.f32 %v5780_v34, %v5674_v8  ;;  %v3856_v46 = vsub.f32 %v5848_v13, %v5679_v11  ;;  %v6596_v48 = vmov 0.0   ;;  %v5295_v57 = vld [vmem:[%s6582_s2 + $0x90] sm:$0xff] }
 0x127   : > { %3344 = vmatpush1.msra.mxu0 %v3334_v9  ;;  %3596 = vmatprep.subr.mxu1 %v3519_v56  ;;  %v3681_v9 = vrot.slane %v6296_v4, %v5746_v20  ;;  %v3875_v25 = vrot.slane %v5298_v2, %v5742_v17  ;;  %v3854_v4 = vsub.f32 %v5862_v27, %v5682_v12 }
 0x128   : > { %5289 = vmatmul.mubr.msk.f32.vlgmr.msra.gmra.mrb[0].mxu1 %vm273_vm2, %v5287_v23  ;;  %5288 = vmatmul.mubr.msk.f32.vlgmr.msra.gmra.mrb[0].mxu0 %vm273_vm2, %v5287_v23  ;;  %v3867_v47 = vrot.slane %v5298_v2, %v5753_v22  ;;  %v3700_v34 = vmul.f32 %v3689_v58, %v3673_v54  ;;  %v3871_v27 = vrot.slane %v5298_v2, %v5744_v19 }
 0x129   : > { %3525 = vmatprep.subr.mxu0 %v3517_v31  ;;  %3597 = vmatpush1.msra.mxu1 %v3518_v40  ;;  %v3698_v37 = vmul.f32 %v3681_v9, %v3671_v0  ;;  %v3883_v13 = vmul.f32 %v3875_v25, %v3856_v46  ;;  %v3855_v36 = vsub.f32 %v5858_v24, %v5672_v6 }
 0x12a   : > { %3526 = vmatpush1.msra.mxu0 %v3516_v55  ;;  %3778 = vmatprep.subr.mxu1 %v3701_v26  ;;  %v3881_v59 = vmul.f32 %v3867_v47, %v3854_v4  ;;  %v3863_v38 = vrot.slane %v5298_v2, %v5746_v20  ;;  %v3853_v5 = vsub.f32 %v5836_v3, %v5674_v8  ;;  %v5310_v2 = vld [vmem:[%s6581_s1 + $0x46] ss:$8 sm:$0xf] }
 0x12b   : > { %3707 = vmatprep.subr.mxu0 %v3699_v62  ;;  %3589 = vmatprep.mubr.f32.mxu0 %v6596_v48  ;;  %v4038_v15 = vsub.f32 %v5887_v45, %v5679_v11  ;;  %v4057_v50 = vrot.slane %v5302_v21, %v5742_v17  ;;  %v4036_v24 = vsub.f32 %v5901_v53, %v5682_v12  ;;  %v5299_v62 = vld [vmem:[%s6582_s2 + $0x98] sm:$0xff] }
 0x12c   : > { %3660 = vmatprep.mubr.f32.mxu1 %v6596_v48  ;;  %v4049_v30 = vrot.slane %v5302_v21, %v5753_v22  ;;  %v3882_v14 = vmul.f32 %v3871_v27, %v3855_v36  ;;  %v3880_v23 = vmul.f32 %v3863_v38, %v3853_v5  ;;  %v4053_v44 = vrot.slane %v5302_v21, %v5744_v19  ;;  %v5307_v5 = vld [vmem:[%s6582_s2 + $0xa8] sm:$0xff] }
 0x12d   : > { %v4065_v3 = vmul.f32 %v4057_v50, %v4038_v15  ;;  %v4037_v53 = vsub.f32 %v5897_v52, %v5672_v6  ;;  %v4045_v31 = vrot.slane %v5302_v21, %v5746_v20  ;;  %v4035_v55 = vsub.f32 %v5877_v39, %v5674_v8 }
 0x12e   : > { %v4063_v45 = vmul.f32 %v4049_v30, %v4036_v24  ;;  %v4220_v56 = vsub.f32 %v5926_v10, %v5679_v11  ;;  %v4239_v40 = vrot.slane %v5306_v51, %v5742_v17  ;;  %v4218_v52 = vsub.f32 %v5940_v29, %v5682_v12  ;;  %v5318_v30 = vld [vmem:[%s6581_s1 + $0x60] ss:$8 sm:$0xf] }
 0x12f   : > { %v4231_v26 = vrot.slane %v5306_v51, %v5753_v22  ;;  %v4064_v58 = vmul.f32 %v4053_v44, %v4037_v53  ;;  %v4062_v54 = vmul.f32 %v4045_v31, %v4035_v55  ;;  %v4235_v9 = vrot.slane %v5306_v51, %v5744_v19  ;;  %v5311_v44 = vld [vmem:[%s6582_s2 + $0xb0] sm:$0xff] }
 0x130   : > { %5293 = vmatmul.mubr.msk.f32.vlgmr.msra.gmra.mrb[0].mxu1 %vm273_vm2, %v5291_v16  ;;  %5292 = vmatmul.mubr.msk.f32.vlgmr.msra.gmra.mrb[0].mxu0 %vm273_vm2, %v5291_v16  ;;  %v4247_v39 = vmul.f32 %v4239_v40, %v4220_v56  ;;  %v4219_v29 = vsub.f32 %v5936_v28, %v5672_v6  ;;  %v4227_v0 = vrot.slane %v5306_v51, %v5746_v20  ;;  %v5303_v16 = vld [vmem:[%s6582_s2 + $0xa0] sm:$0xff] }
 0x131   : > { %3779 = vmatpush1.msra.mxu1 %v3700_v34  ;;  %3708 = vmatpush1.msra.mxu0 %v3698_v37  ;;  %v4245_v10 = vmul.f32 %v4231_v26, %v4218_v52  ;;  %v4217_v46 = vsub.f32 %v5916_v1, %v5674_v8  ;;  %v4402_v25 = vsub.f32 %v5965_v49, %v5679_v11  ;;  %v5322_v56 = vld [vmem:[%s6581_s1 + $0x61] ss:$8 sm:$0xf] }
 0x132   : > { %3960 = vmatprep.subr.mxu1 %v3883_v13  ;;  %3889 = vmatprep.subr.mxu0 %v3881_v59  ;;  %v4421_v4 = vrot.slane %v5310_v2, %v5742_v17  ;;  %v4400_v28 = vsub.f32 %v5979_v61, %v5682_v12  ;;  %v4413_v47 = vrot.slane %v5310_v2, %v5753_v22  ;;  %v5314_v59 = vld [vmem:[%s6581_s1 + $0x47] ss:$8 sm:$0xf] }
 0x133   : > { %3771 = vmatprep.mubr.f32.mxu0 %v6596_v48  ;;  %3842 = vmatprep.mubr.f32.mxu1 %v6596_v48  ;;  %v4246_v34 = vmul.f32 %v4235_v9, %v4219_v29  ;;  %v4244_v37 = vmul.f32 %v4227_v0, %v4217_v46  ;;  %v4417_v13 = vrot.slane %v5310_v2, %v5744_v19  ;;  %v6600_v0 = vld [vmem:[#allocation5_spill] sm:$0xff] }
 0x134   : > { %v4429_v1 = vmul.f32 %v4421_v4, %v4402_v25  ;;  %v4427_v49 = vmul.f32 %v4413_v47, %v4400_v28  ;;  %v4401_v61 = vsub.f32 %v5975_v60, %v5672_v6  ;;  %v4409_v27 = vrot.slane %v5310_v2, %v5746_v20  ;;  %v5319_v25 = vld [vmem:[%s6582_s2 + $0xc0] sm:$0xff] }
 0x135   : > { %v4399_v36 = vsub.f32 %v5955_v42, %v5674_v8  ;;  %v4584_v21 = vsub.f32 %v6004_v33, %v5679_v11  ;;  %v4603_v38 = vrot.slane %v5314_v59, %v5742_v17  ;;  %v4582_v60 = vsub.f32 %v6018_v43, %v5682_v12 }
 0x136   : > { %v4595_v15 = vrot.slane %v5314_v59, %v5753_v22  ;;  %v4428_v50 = vmul.f32 %v4417_v13, %v4401_v61  ;;  %v4583_v43 = vsub.f32 %v6014_v41, %v5672_v6  ;;  %v4764_v41 = vsub.f32 %v6057_v35, %v5682_v12  ;;  %v5506_v13 = vld [vmem:[%s5666_s28 + $0x10] sm:$0xff] }
 0x137   : > { %v4426_v24 = vmul.f32 %v4409_v27, %v4399_v36  ;;  %v4611_v42 = vmul.f32 %v4603_v38, %v4584_v21  ;;  %v4777_v53 = vrot.slane %v5318_v30, %v5753_v22  ;;  %v4781_v55 = vrot.slane %v5318_v30, %v5744_v19  ;;  %v5507_v27 = vld [vmem:[%s5666_s28] sm:$0xff]  ;;  %v5508_v38 = vld [vmem:[%s5666_s28 + $0x8] sm:$0xff] }
 0x138   : > { %5297 = vmatmul.mubr.msk.f32.vlgmr.msra.gmra.mrb[0].mxu1 %vm273_vm2, %v5295_v57  ;;  %5296 = vmatmul.mubr.msk.f32.vlgmr.msra.gmra.mrb[0].mxu0 %vm273_vm2, %v5295_v57  ;;  %v4609_v33 = vmul.f32 %v4595_v15, %v4582_v60  ;;  %v4599_v57 = vrot.slane %v5314_v59, %v5744_v19  ;;  %v4765_v35 = vsub.f32 %v6053_v32, %v5672_v6  ;;  %v6598_v32 = vld [vmem:[#allocation8_spill] sm:$0xff] }
 0x139   : > { %3961 = vmatpush1.msra.mxu1 %v3882_v14  ;;  %3890 = vmatpush1.msra.mxu0 %v3880_v23  ;;  %v4591_v14 = vrot.slane %v5314_v59, %v5746_v20  ;;  %v4581_v23 = vsub.f32 %v5994_v18, %v5674_v8  ;;  %v4773_v40 = vrot.slane %v5318_v30, %v5746_v20 }
 0x13a   : > { %4142 = vmatprep.subr.mxu1 %v4065_v3  ;;  %4071 = vmatprep.subr.mxu0 %v4063_v45  ;;  %v4766_v3 = vsub.f32 %v6043_v7, %v5679_v11  ;;  %v4785_v45 = vrot.slane %v5318_v30, %v5742_v17  ;;  %v4610_v51 = vmul.f32 %v4599_v57, %v4583_v43 }
 0x13b   : > { %3953 = vmatprep.mubr.f32.mxu0 %v6596_v48  ;;  %4024 = vmatprep.mubr.f32.mxu1 %v6596_v48  ;;  %v4608_v31 = vmul.f32 %v4591_v14, %v4581_v23  ;;  %v4791_v7 = vmul.f32 %v4777_v53, %v4764_v41  ;;  %v4763_v52 = vsub.f32 %v6033_v63, %v5674_v8 }
 0x13c   : > { %v4793_v18 = vmul.f32 %v4785_v45, %v4766_v3  ;;  %v4792_v9 = vmul.f32 %v4781_v55, %v4765_v35  ;;  %v4945_v46 = vsub.f32 %v6600_v0, %v5674_v8 }
 0x13d   : > { %v4790_v29 = vmul.f32 %v4773_v40, %v4763_v52 }
 0x140   : > { %5301 = vmatmul.mubr.msk.f32.vlgmr.msra.gmra.mrb[0].mxu1 %vm273_vm2, %v5299_v62  ;;  %5300 = vmatmul.mubr.msk.f32.vlgmr.msra.gmra.mrb[0].mxu0 %vm273_vm2, %v5299_v62  ;;  %v6597_v62 = vld [vmem:[#allocation6_spill] sm:$0xff] }
 0x141   : > { %4143 = vmatpush1.msra.mxu1 %v4064_v58  ;;  %4072 = vmatpush1.msra.mxu0 %v4062_v54  ;;  %v4948_v26 = vsub.f32 %v6597_v62, %v5679_v11  ;;  %v4967_v58 = vrot.slane %v5322_v56, %v5742_v17  ;;  %v4946_v54 = vsub.f32 %v6598_v32, %v5682_v12  ;;  %v6599_v12 = vld [vmem:[#allocation7_spill] sm:$0xff] }
 0x142   : > { %4324 = vmatprep.subr.mxu1 %v4247_v39  ;;  %4253 = vmatprep.subr.mxu0 %v4245_v10  ;;  %v5315_v39 = vld [vmem:[%s6582_s2 + $0xb8] sm:$0xff]  ;;  %v4959_v10 = vrot.slane %v5322_v56, %v5753_v22  ;;  %v4963_v17 = vrot.slane %v5322_v56, %v5744_v19  ;;  %v4947_v2 = vsub.f32 %v6599_v12, %v5672_v6  ;;  %v5323_v6 = vld [vmem:[%s6582_s2 + $0xc8] sm:$0xff] }
 0x143   : > { %4135 = vmatprep.mubr.f32.mxu0 %v6596_v48  ;;  %4206 = vmatprep.mubr.f32.mxu1 %v6596_v48  ;;  %v4975_v63 = vmul.f32 %v4967_v58, %v4948_v26  ;;  %v4955_v22 = vrot.slane %v5322_v56, %v5746_v20 }
 0x144   : > { %v4973_v11 = vmul.f32 %v4959_v10, %v4946_v54  ;;  %v4974_v4 = vmul.f32 %v4963_v17, %v4947_v2 }
 0x145   : > { %v4972_v28 = vmul.f32 %v4955_v22, %v4945_v46 }
 0x148   : > { %5305 = vmatmul.mubr.msk.f32.vlgmr.msra.gmra.mrb[0].mxu1 %vm273_vm2, %v5303_v16  ;;  %5304 = vmatmul.mubr.msk.f32.vlgmr.msra.gmra.mrb[0].mxu0 %vm273_vm2, %v5303_v16 }
 0x149   : > { %4325 = vmatpush1.msra.mxu1 %v4246_v34  ;;  %4254 = vmatpush1.msra.mxu0 %v4244_v37 }
 0x14a   : > { %4506 = vmatprep.subr.mxu1 %v4429_v1  ;;  %4435 = vmatprep.subr.mxu0 %v4427_v49 }
 0x14b   : > { %4317 = vmatprep.mubr.f32.mxu0 %v6596_v48  ;;  %4388 = vmatprep.mubr.f32.mxu1 %v6596_v48 }
 0x150   : > { %5309 = vmatmul.mubr.msk.f32.vlgmr.msra.gmra.mrb[0].mxu1 %vm273_vm2, %v5307_v5  ;;  %5308 = vmatmul.mubr.msk.f32.vlgmr.msra.gmra.mrb[0].mxu0 %vm273_vm2, %v5307_v5  ;;  %v5509_v5 = vld [vmem:[%s5666_s28 + $0x18] sm:$0xff]  ;;  %s5592_s28 = smov [#allocation2]  }
 0x151   : > { %4507 = vmatpush1.msra.mxu1 %v4428_v50  ;;  %4436 = vmatpush1.msra.mxu0 %v4426_v24  ;;  %s5514_s19 = sshll.u32 %s5592_s28, 4  ;;  %s5515_s19 = int_to_ptr.vmem [resolvable:$false] %s5514_s19 }
 0x152   : > { %4688 = vmatprep.subr.mxu1 %v4611_v42  ;;  %4617 = vmatprep.subr.mxu0 %v4609_v33  ;;  %s5516_s20 = scalar_lea.vmem %s5515_s19, 1024  ;;  %p5517_p0 = scmp.lt.s32.totalorder %s6540_s8, %s5515_s19 }
 0x153   : > { %4499 = vmatprep.mubr.f32.mxu0 %v6596_v48  ;;  %4570 = vmatprep.mubr.f32.mxu1 %v6596_v48  ;;  %p5518_p1 = scmp.lt.s32.totalorder %s5516_s20, %s5510_s17 }
 0x155   : > { %p5519_p2 = por %p5518_p1, %p5517_p0 }
 0x157   : > { %p5520_p3 = pnand %p5519_p2, %p5513_p13 }
 0x158   : > { %5313 = vmatmul.mubr.msk.f32.vlgmr.msra.gmra.mrb[0].mxu1 %vm273_vm2, %v5311_v44  ;;  %5312 = vmatmul.mubr.msk.f32.vlgmr.msra.gmra.mrb[0].mxu0 %vm273_vm2, %v5311_v44 }
 0x159   : > { %4689 = vmatpush1.msra.mxu1 %v4610_v51  ;;  %4618 = vmatpush1.msra.mxu0 %v4608_v31 }
 0x15a   : > { %4870 = vmatprep.subr.mxu1 %v4793_v18  ;;  %4799 = vmatprep.subr.mxu0 %v4791_v7 }
 0x15b   : > { %4681 = vmatprep.mubr.f32.mxu0 %v6596_v48  ;;  %4752 = vmatprep.mubr.f32.mxu1 %v6596_v48 }
 0x160   : > { %5317 = vmatmul.mubr.msk.f32.vlgmr.msra.gmra.mrb[0].mxu1 %vm273_vm2, %v5315_v39  ;;  %5316 = vmatmul.mubr.msk.f32.vlgmr.msra.gmra.mrb[0].mxu0 %vm273_vm2, %v5315_v39 }
 0x161   : > { %4871 = vmatpush1.msra.mxu1 %v4792_v9  ;;  %4800 = vmatpush1.msra.mxu0 %v4790_v29 }
 0x162   : > { %5052 = vmatprep.subr.mxu1 %v4975_v63  ;;  %4981 = vmatprep.subr.mxu0 %v4973_v11 }
 0x163   : > { %4863 = vmatprep.mubr.f32.mxu0 %v6596_v48  ;;  %4934 = vmatprep.mubr.f32.mxu1 %v6596_v48 }
 0x168   : > { %5321 = vmatmul.mubr.msk.f32.vlgmr.msra.gmra.mrb[0].mxu1 %vm273_vm2, %v5319_v25  ;;  %5320 = vmatmul.mubr.msk.f32.vlgmr.msra.gmra.mrb[0].mxu0 %vm273_vm2, %v5319_v25 }
 0x169   : > { %5053 = vmatpush1.msra.mxu1 %v4974_v4  ;;  %4982 = vmatpush1.msra.mxu0 %v4972_v28 }
 0x16a   : > { %5045 = vmatprep.mubr.f32.mxu0 %v6596_v48  ;;  %5116 = vmatprep.mubr.f32.mxu1 %v6596_v48 }
 0x170   : > { %5325 = vmatmul.mubr.msk.f32.vlgmr.msra.gmra.mrb[0].mxu1 %vm273_vm2, %v5323_v6  ;;  %5324 = vmatmul.mubr.msk.f32.vlgmr.msra.gmra.mrb[0].mxu0 %vm273_vm2, %v5323_v6 }
 0x243   : > { %v5118_v8 = vpop.f32.mrb[0].mxu1  ;;  %v5047_v19 = vpop.f32.mrb[0].mxu0 }
 0x244   : > { %v5131_v20 = vmul.f32 1.442695, %v5118_v8  ;;  %v5120_v16 = vpop.f32.mrb[1].mxu1  ;;  %v5127_v47 = vmul.f32 1.442695, %v5047_v19  ;;  %v5049_v34 = vpop.f32.mrb[1].mxu0 }
 0x245   : > { %v5133_v37 = vmul.f32 1.442695, %v5120_v16  ;;  %v5129_v48 = vmul.f32 1.442695, %v5049_v34 }
 0x246   : > { %5498 = vpow2.f32 %v5131_v20 }
 0x247   : > { %5500 = vpow2.f32 %v5127_v47 }
 0x248   : > { %5502 = vpow2.f32 %v5129_v48 }
 0x249   : > { %5504 = vpow2.f32 %v5133_v37 }
 0x250   : > { %v5499_v1 = vpop.eup %5498 }
 0x251   : > { %v5501_v49 = vpop.eup %5500  ;;  %v5137_v61 = vmul.f32 %v5506_v13, %v5499_v1 }
 0x252   : > { %v5503_v59 = vpop.eup %5502  ;;  %v5135_v36 = vmul.f32 %v5507_v27, %v5501_v49 }
 0x253   : > { %v5505_v21 = vpop.eup %5504  ;;  %v5136_v60 = vmul.f32 %v5508_v38, %v5503_v59  ;;  %5141 = vst [vmem:[%s163_s7 + $0x10] sm:$0xff] %v5137_v61 }
 0x254   : > { %v5138_v15 = vmul.f32 %v5509_v5, %v5505_v21  ;;  %5139 = vst [vmem:[%s163_s7] sm:$0xff] %v5135_v36 }
 0x255   : > { %5140 = vst [vmem:[%s163_s7 + $0x8] sm:$0xff] %v5136_v60 }
 0x256   : > { %5142 = vst [vmem:[%s163_s7 + $0x18] sm:$0xff] %v5138_v15 }
 0x257   : > { %5523 = shalt.err (!%p5520_p3)
}
 0x258   : > { %s5524_s24 = scalar_lea.hbm %s6538_s11, 512  ;;  %s5528_s27 = scalar_lea.hbm %s6583_s3, 1024 }
 0x259   : > { %p5525_p4 = scmp.ne.s32.totalorder %s6538_s11, %s5524_s24  ;;  %p5529_p9 = scmp.lt.u32.totalorder %s6538_s11, %s6583_s3 }
 0x25a   : > { %p5530_p10 = scmp.lt.u32.totalorder %s5528_s27, %s5524_s24  ;;  %p5532_p12 = scmp.lt.u32.totalorder %s5524_s24, %s6538_s11 }
 0x25b   : > { %p5526_p7 = pnand %p5525_p4, %p5651_p5 }
 0x25c   : > { %p5531_p11 = por %p5530_p10, %p5529_p9 }
 0x25d   : > { %p5527_p8 = pneg %p5526_p7 }
 0x25e   : > { %p5533_p13 = por %p5532_p12, %p5531_p11 }
 0x260   : > { %p5534_p0 = pnand %p5533_p13, %p5527_p8 }
 0x262   : > { %5537 = shalt.err (!%p5534_p0)
}
 0x263   : > { %5433 = dma.vmem_to_hbm [thread:$0]  (%p5651_p5), %s6540_s8, 512, %s6538_s11, %s5144_s16  }
 0x264 PF: > { %p5439_p1 = scmp.ge.s32.totalorder %s5572_s15, 2  ;;  %s5170_s4 = sand.u32 1, %s5560_s12  }
 0x265   : > { %s5171_s5 = scalar_lea.sflag [#allocation3], %s5170_s4 }
 0x266   : > { %p5436_p2 = pnand %p5439_p1, %p5655_p6 }
 0x268   : > { %5555 = dma.done.wait (!%p5436_p2), %s5171_s5, 512  }
 0x269   : > { %5557 = vsyncadd (!%p5436_p2), %s5171_s5, 4294966784  ;;  %p13_p3 = scmp.ge.s32.totalorder %s5638_s18, 4   ;;  %s6601_s12 = smov %s5564_s13 }
 0x26a   : > { %s6602_s13 = smov %s5568_s14  ;;  %s6603_s14 = smov %s5649_s21 }
 0x26b   : > { %s6604_s15 = smov %s5638_s18  ;;  %15 = sbr.rel (!%p13_p3) target bundleno = 3 (0x3), region = 117 }
 0x272   :  { %5176 = vsyncpa [#allocation3], 1 }
 0x273   :  { %5178 = vsyncpa [#allocation3 + $0x1], 1 }

</bundles_post_ra>
